<compile_context>
chip_gen: v7x
topology: tpu7x:2x2x1
jax: 0.10.0
libtpu: 0.0.40
codegen_flags: <defaults>
</compile_context>

<pallas_src>
import jax
import jax.numpy as jnp
from jax.experimental import pallas as pl
from jax.experimental.pallas import tpu as pltpu

# ---- small synthetic CLIP-text config -------------------------------------
B = 2          # batch
S = 8          # context length (power of two -> xor mask trick)
W = 32         # transformer width
H = 4          # attention heads
D = W // H     # head dim
FF = 4 * W     # MLP hidden (=128)
E = 16         # text embedding dim (text_projection output)
V = 64         # vocab size
L = 2          # transformer layers
BS = B * S
LANES = 128
OUT_ROWS = BS + 8      # word rows + 8 pooled/enc rows (sublane-aligned slab)
EPS = 1e-5


def _layernorm(x, w, b):
    mu = jnp.mean(x, axis=-1, keepdims=True)
    xc = x - mu
    var = jnp.mean(xc * xc, axis=-1, keepdims=True)
    return xc * jax.lax.rsqrt(var + EPS) * w + b


# ---------------------------------------------------------------------------
# Fused kernel (single grid step): embed-added x -> L residual attention
# blocks (statically unrolled) -> ln_final -> EOT pooling -> text_projection
# ---------------------------------------------------------------------------
def fused_kernel(eot_ref,                               # SMEM scalar prefetch (B,)
                 x0_ref, small_ref, wqkv_ref, wo_ref, wfc_ref, wproj_ref,
                 lnf_ref, proj_ref,
                 out_ref):
    x = x0_ref[...]                                     # (BS, W)

    # Layer-invariant block-diagonal causal mask over the flattened (B*S) axis,
    # built exactly once.  Same-batch test uses xor (S is a power of two).
    row = jax.lax.broadcasted_iota(jnp.int32, (BS, BS), 0)
    col = jax.lax.broadcasted_iota(jnp.int32, (BS, BS), 1)
    same_batch = (row ^ col) < S
    mask = jnp.where(same_batch & (col <= row), 0.0, -1e9).astype(jnp.float32)

    for l in range(L):                                  # statically unrolled (L == 2)
        sp = small_ref[l]                               # (8, 128) packed small params
        ln1_w, ln1_b = sp[0:1, :W], sp[1:2, :W]
        ln2_w, ln2_b = sp[2:3, :W], sp[3:4, :W]
        bo, b_proj = sp[4:5, :W], sp[5:6, :W]
        bqkv = sp[6:7, :3 * W]                          # q part pre-scaled by 1/sqrt(D)
        bfc = sp[7:8, :FF]
        wqkv = wqkv_ref[l]                              # (W, 3W), q cols pre-scaled
        wo = wo_ref[l]                                  # (W, W)
        wfc = wfc_ref[l]                                # (W, FF)
        wproj = wproj_ref[l]                            # (FF, W)

        # ---- attention (pre-LN, causal) ----
        xn = _layernorm(x, ln1_w, ln1_b)
        qkv = jnp.dot(xn, wqkv, preferred_element_type=jnp.float32) + bqkv  # (BS, 3W)

        x_attn = x + bo                                 # residual + output-proj bias
        for h in range(H):                              # tiny static head loop
            qh = qkv[:, h * D:(h + 1) * D]              # (BS, D), scale already folded
            kh = qkv[:, W + h * D:W + (h + 1) * D]
            vh = qkv[:, 2 * W + h * D:2 * W + (h + 1) * D]
            s = jax.lax.dot_general(
                qh, kh, dimension_numbers=(((1,), (1,)), ((), ())),
                preferred_element_type=jnp.float32) + mask          # (BS, BS)
            s = s - jnp.max(s, axis=-1, keepdims=True)
            p = jnp.exp(s)
            p = p * pl.reciprocal(jnp.sum(p, axis=-1, keepdims=True), approx=False)
            oh = jnp.dot(p, vh, preferred_element_type=jnp.float32)  # (BS, D)
            # Fold the head directly into the output projection:
            # attn @ Wo == sum_h o_h @ Wo[h*D:(h+1)*D, :]  (sublane-aligned Wo slice)
            x_attn = x_attn + jnp.dot(oh, wo[h * D:(h + 1) * D, :],
                                      preferred_element_type=jnp.float32)
        x = x_attn

        # ---- MLP (QuickGELU), batched over B*S ----
        xn2 = _layernorm(x, ln2_w, ln2_b)
        hdn = jnp.dot(xn2, wfc, preferred_element_type=jnp.float32) + bfc    # (BS, FF)
        hdn = hdn * jax.nn.sigmoid(1.702 * hdn)
        x = x + jnp.dot(hdn, wproj, preferred_element_type=jnp.float32) + b_proj

    # ---- final LN ----
    lnf = lnf_ref[...]                                  # (2, W)
    word = _layernorm(x, lnf[0:1, :], lnf[1:2, :])      # (BS, W)

    # ---- EOT pooling as ONE one-hot matmul on the MXU ----
    tgt_rows = [jnp.zeros((1, BS), jnp.int32) + (b * S + eot_ref[b]) for b in range(B)]
    tgt_rows.append(jnp.full((8 - B, BS), -1, jnp.int32))   # padding rows never match
    tgt = jnp.concatenate(tgt_rows, axis=0)                 # (8, BS)
    col_bs = jax.lax.broadcasted_iota(jnp.int32, (8, BS), 1)
    onehot = (col_bs == tgt).astype(jnp.float32)            # (8, BS)
    pooled = jnp.dot(onehot, word, preferred_element_type=jnp.float32)       # (8, W)
    enc = jnp.dot(pooled, proj_ref[...], preferred_element_type=jnp.float32)  # (8, E)

    # ---- lane-dense packed output slab: one unmasked full-ref store ----
    word_pad = jnp.concatenate(
        [word, jnp.zeros((BS, LANES - W), jnp.float32)], axis=1)             # (16, 128)
    enc_pad = jnp.concatenate(
        [enc, jnp.zeros((8, LANES - E), jnp.float32)], axis=1)               # (8, 128)
    out_ref[...] = jnp.concatenate([word_pad, enc_pad], axis=0)              # (24, 128)


def _full(*shape):
    """Full-extent BlockSpec (single grid step, constant block index)."""
    n = len(shape)
    return pl.BlockSpec(tuple(shape), lambda i, eot, _n=n: (0,) * _n)


fused_call = pl.pallas_call(
    fused_kernel,
    out_shape=jax.ShapeDtypeStruct((OUT_ROWS, LANES), jnp.float32),
    grid_spec=pltpu.PrefetchScalarGridSpec(
        num_scalar_prefetch=1,                # eot indices -> SMEM
        grid=(1,),                            # single step: everything resident
        in_specs=[
            _full(BS, W),                     # x0 (embed + positional, flattened)
            _full(L, 8, LANES),               # packed small params per layer
            _full(L, W, 3 * W),               # fused Wq|Wk|Wv (q pre-scaled)
            _full(L, W, W),                   # Wo
            _full(L, W, FF),                  # W_fc
            _full(L, FF, W),                  # W_proj
            _full(2, W),                      # ln_final weight, bias
            _full(W, E),                      # text_projection
        ],
        out_specs=_full(OUT_ROWS, LANES),
    ),
    compiler_params=pltpu.CompilerParams(
        dimension_semantics=("arbitrary",),
    ),
)


# ---------------------------------------------------------------------------
# Parameter init (deterministic, synthetic) + packing into kernel layout
# ---------------------------------------------------------------------------
def init_reference_params(key):
    keys = iter(jax.random.split(key, 256))

    def nrm(shape, scale=0.02):
        return (scale * jax.random.normal(next(keys), shape)).astype(jnp.float32)

    layers = []
    for _ in range(L):
        layers.append(dict(
            ln1_w=1.0 + nrm((W,)), ln1_b=nrm((W,)),
            ln2_w=1.0 + nrm((W,)), ln2_b=nrm((W,)),
            w_qkv=nrm((W, 3 * W)), b_qkv=nrm((3 * W,)),
            w_o=nrm((W, W)), b_o=nrm((W,)),
            w_fc=nrm((W, FF)), b_fc=nrm((FF,)),
            w_proj=nrm((FF, W)), b_proj=nrm((W,)),
        ))
    return dict(
        token_embedding=nrm((V, W)),
        positional_embedding=nrm((1, S, W), 0.01),
        layers=layers,
        lnf_w=1.0 + nrm((W,)), lnf_b=nrm((W,)),
        text_projection=nrm((W, E)),
    )


def pack_kernel_params(ref):
    """Kernel layout: fold 1/sqrt(D) into q weights/bias, pack small vectors."""
    scale = 1.0 / (D ** 0.5)

    def pad_row(v):
        return jnp.pad(v, (0, LANES - v.shape[0]))[None, :]

    small, wqkv, wo, wfc, wproj = [], [], [], [], []
    for lp in ref["layers"]:
        wq = lp["w_qkv"][:, :W] * scale
        bq = lp["b_qkv"][:W] * scale
        wqkv.append(jnp.concatenate([wq, lp["w_qkv"][:, W:]], axis=1))
        b_qkv = jnp.concatenate([bq, lp["b_qkv"][W:]], axis=0)
        small.append(jnp.concatenate([
            pad_row(lp["ln1_w"]), pad_row(lp["ln1_b"]),
            pad_row(lp["ln2_w"]), pad_row(lp["ln2_b"]),
            pad_row(lp["b_o"]), pad_row(lp["b_proj"]),
            pad_row(b_qkv), pad_row(lp["b_fc"]),
        ], axis=0))                                        # (8, 128)
        wo.append(lp["w_o"]); wfc.append(lp["w_fc"]); wproj.append(lp["w_proj"])

    return dict(
        token_embedding=ref["token_embedding"],
        positional_embedding=ref["positional_embedding"],
        small=jnp.stack(small),          # (L, 8, 128)
        w_qkv=jnp.stack(wqkv),           # (L, W, 3W)
        w_o=jnp.stack(wo),               # (L, W, W)
        w_fc=jnp.stack(wfc),             # (L, W, FF)
        w_proj=jnp.stack(wproj),         # (L, FF, W)
        lnf=jnp.stack([ref["lnf_w"], ref["lnf_b"]]),   # (2, W)
        proj=ref["text_projection"],     # (W, E)
    )


@jax.jit
def text_clip_forward(text, kparams):
    # Glue (plain JAX): data-dependent token-embedding gather, positional add,
    # and the EOT argmax scalar indices (scalar-prefetched into SMEM).
    tok = jnp.take(kparams["token_embedding"], text, axis=0)            # (B, S, W)
    x0 = (tok + kparams["positional_embedding"]).reshape(BS, W)
    eot = jnp.argmax(text, axis=-1).astype(jnp.int32)                   # (B,)
    slab = fused_call(eot, x0, kparams["small"], kparams["w_qkv"], kparams["w_o"],
                      kparams["w_fc"], kparams["w_proj"], kparams["lnf"],
                      kparams["proj"])
    word_emb = slab[:BS, :W].reshape(B, S, W)
    enctxt = slab[BS:BS + B, :E]
    return enctxt, word_emb           # matches TextCLIP return order


# ---------------------------------------------------------------------------
# Pure-JAX reference for validation
# ---------------------------------------------------------------------------
@jax.jit
def text_clip_reference(text, ref):
    x = jnp.take(ref["token_embedding"], text, axis=0) + ref["positional_embedding"]
    idx = jnp.arange(S)
    cmask = jnp.where(idx[None, :] <= idx[:, None], 0.0, -1e9).astype(jnp.float32)
    for lp in ref["layers"]:
        xn = _layernorm(x, lp["ln1_w"], lp["ln1_b"])
        qkv = xn @ lp["w_qkv"] + lp["b_qkv"]
        q, k, v = qkv[..., :W], qkv[..., W:2 * W], qkv[..., 2 * W:]
        qh = q.reshape(B, S, H, D).transpose(0, 2, 1, 3)
        kh = k.reshape(B, S, H, D).transpose(0, 2, 1, 3)
        vh = v.reshape(B, S, H, D).transpose(0, 2, 1, 3)
        s = jnp.einsum("bhqd,bhkd->bhqk", qh, kh) / (D ** 0.5) + cmask
        p = jax.nn.softmax(s, axis=-1)
        attn = jnp.einsum("bhqk,bhkd->bhqd", p, vh).transpose(0, 2, 1, 3).reshape(B, S, W)
        x = x + attn @ lp["w_o"] + lp["b_o"]
        xn2 = _layernorm(x, lp["ln2_w"], lp["ln2_b"])
        hdn = xn2 @ lp["w_fc"] + lp["b_fc"]
        hdn = hdn * jax.nn.sigmoid(1.702 * hdn)
        x = x + hdn @ lp["w_proj"] + lp["b_proj"]
    word = _layernorm(x, ref["lnf_w"], ref["lnf_b"])
    eot = jnp.argmax(text, axis=-1)
    enc = word[jnp.arange(B), eot] @ ref["text_projection"]
    return enc, word


if __name__ == "__main__":
    key = jax.random.PRNGKey(0)
    kp, kt = jax.random.split(key)
    ref_params = init_reference_params(kp)
    ker_params = pack_kernel_params(ref_params)
    text = jax.random.randint(kt, (B, S), 0, V, dtype=jnp.int32)

    enctxt, word_emb = text_clip_forward(text, ker_params)
    jax.block_until_ready((enctxt, word_emb))

    enc_ref, word_ref = text_clip_reference(text, ref_params)
    assert enctxt.shape == (B, E) and word_emb.shape == (B, S, W)
    assert jnp.allclose(enctxt, enc_ref, atol=1e-4, rtol=1e-4)
    assert jnp.allclose(word_emb, word_ref, atol=1e-4, rtol=1e-4)

    print("KERNEL_OK")
</pallas_src>

<mosaic_0001>
module attributes {stable_mosaic.version = 11 : i64} {
  func.func @fused_kernel(%arg0: i32, %arg1: memref<2xi32, #tpu.memory_space<smem>>, %arg2: memref<16x32xf32, #tpu.memory_space<vmem>>, %arg3: memref<2x8x128xf32, #tpu.memory_space<vmem>>, %arg4: memref<2x32x96xf32, #tpu.memory_space<vmem>>, %arg5: memref<2x32x32xf32, #tpu.memory_space<vmem>>, %arg6: memref<2x32x128xf32, #tpu.memory_space<vmem>>, %arg7: memref<2x128x32xf32, #tpu.memory_space<vmem>>, %arg8: memref<2x32xf32, #tpu.memory_space<vmem>>, %arg9: memref<32x16xf32, #tpu.memory_space<vmem>>, %arg10: memref<24x128xf32, #tpu.memory_space<vmem>>) attributes {dimension_semantics = [#tpu.dimension_semantics<arbitrary>], iteration_bounds = array<i64: 1>, scalar_prefetch = 1 : i64, scratch_operands = 0 : i64, tpu.core_type = #tpu.core_type<tc>, window_params = [{pipeline_mode = #tpu.pipeline_mode<synchronous>, transform_indices = @transform_0, window_bounds = array<i64: 16, 32>}, {pipeline_mode = #tpu.pipeline_mode<synchronous>, transform_indices = @transform_1, window_bounds = array<i64: 2, 8, 128>}, {pipeline_mode = #tpu.pipeline_mode<synchronous>, transform_indices = @transform_2, window_bounds = array<i64: 2, 32, 96>}, {pipeline_mode = #tpu.pipeline_mode<synchronous>, transform_indices = @transform_3, window_bounds = array<i64: 2, 32, 32>}, {pipeline_mode = #tpu.pipeline_mode<synchronous>, transform_indices = @transform_4, window_bounds = array<i64: 2, 32, 128>}, {pipeline_mode = #tpu.pipeline_mode<synchronous>, transform_indices = @transform_5, window_bounds = array<i64: 2, 128, 32>}, {pipeline_mode = #tpu.pipeline_mode<synchronous>, transform_indices = @transform_6, window_bounds = array<i64: 2, 32>}, {pipeline_mode = #tpu.pipeline_mode<synchronous>, transform_indices = @transform_7, window_bounds = array<i64: 32, 16>}, {pipeline_mode = #tpu.pipeline_mode<synchronous>, transform_indices = @transform_8, window_bounds = array<i64: 24, 128>}]} {
    %c0 = arith.constant 0 : index
    %c0_0 = arith.constant 0 : index
    %0 = vector.load %arg2[%c0, %c0_0] : memref<16x32xf32, #tpu.memory_space<vmem>>, vector<16x32xf32>
    %1 = tpu.iota {dimensions = array<i32: 0>} : vector<16x16xi32>
    %2 = tpu.iota {dimensions = array<i32: 1>} : vector<16x16xi32>
    %3 = arith.xori %1, %2 : vector<16x16xi32>
    %c8_i32 = arith.constant 8 : i32
    %4 = vector.broadcast %c8_i32 : i32 to vector<16x16xi32>
    %5 = arith.cmpi slt, %3, %4 : vector<16x16xi32>
    %6 = arith.cmpi sle, %2, %1 : vector<16x16xi32>
    %7 = arith.andi %5, %6 : vector<16x16xi1>
    %cst = arith.constant 0.000000e+00 : f32
    %cst_1 = arith.constant -1.000000e+09 : f32
    %8 = vector.broadcast %cst : f32 to vector<16x16xf32>
    %9 = vector.broadcast %cst_1 : f32 to vector<16x16xf32>
    %10 = arith.select %7, %8, %9 : vector<16x16xi1>, vector<16x16xf32>
    %c0_2 = arith.constant 0 : index
    %c0_3 = arith.constant 0 : index
    %c0_4 = arith.constant 0 : index
    %11 = vector.load %arg3[%c0_2, %c0_3, %c0_4] : memref<2x8x128xf32, #tpu.memory_space<vmem>>, vector<1x8x128xf32>
    %12 = vector.shape_cast %11 : vector<1x8x128xf32> to vector<8x128xf32>
    %13 = vector.extract_strided_slice %12 {offsets = [0, 0], sizes = [1, 32], strides = [1, 1]} : vector<8x128xf32> to vector<1x32xf32>
    %14 = vector.extract_strided_slice %12 {offsets = [1, 0], sizes = [1, 32], strides = [1, 1]} : vector<8x128xf32> to vector<1x32xf32>
    %15 = vector.extract_strided_slice %12 {offsets = [2, 0], sizes = [1, 32], strides = [1, 1]} : vector<8x128xf32> to vector<1x32xf32>
    %16 = vector.extract_strided_slice %12 {offsets = [3, 0], sizes = [1, 32], strides = [1, 1]} : vector<8x128xf32> to vector<1x32xf32>
    %17 = vector.extract_strided_slice %12 {offsets = [4, 0], sizes = [1, 32], strides = [1, 1]} : vector<8x128xf32> to vector<1x32xf32>
    %18 = vector.extract_strided_slice %12 {offsets = [5, 0], sizes = [1, 32], strides = [1, 1]} : vector<8x128xf32> to vector<1x32xf32>
    %19 = vector.extract_strided_slice %12 {offsets = [6, 0], sizes = [1, 96], strides = [1, 1]} : vector<8x128xf32> to vector<1x96xf32>
    %20 = vector.extract_strided_slice %12 {offsets = [7, 0], sizes = [1, 128], strides = [1, 1]} : vector<8x128xf32> to vector<1x128xf32>
    %c0_5 = arith.constant 0 : index
    %c0_6 = arith.constant 0 : index
    %c0_7 = arith.constant 0 : index
    %21 = vector.load %arg4[%c0_5, %c0_6, %c0_7] : memref<2x32x96xf32, #tpu.memory_space<vmem>>, vector<1x32x96xf32>
    %22 = vector.shape_cast %21 : vector<1x32x96xf32> to vector<32x96xf32>
    %c0_8 = arith.constant 0 : index
    %c0_9 = arith.constant 0 : index
    %c0_10 = arith.constant 0 : index
    %23 = vector.load %arg5[%c0_8, %c0_9, %c0_10] : memref<2x32x32xf32, #tpu.memory_space<vmem>>, vector<1x32x32xf32>
    %24 = vector.shape_cast %23 : vector<1x32x32xf32> to vector<32x32xf32>
    %c0_11 = arith.constant 0 : index
    %c0_12 = arith.constant 0 : index
    %c0_13 = arith.constant 0 : index
    %25 = vector.load %arg6[%c0_11, %c0_12, %c0_13] : memref<2x32x128xf32, #tpu.memory_space<vmem>>, vector<1x32x128xf32>
    %26 = vector.shape_cast %25 : vector<1x32x128xf32> to vector<32x128xf32>
    %c0_14 = arith.constant 0 : index
    %c0_15 = arith.constant 0 : index
    %c0_16 = arith.constant 0 : index
    %27 = vector.load %arg7[%c0_14, %c0_15, %c0_16] : memref<2x128x32xf32, #tpu.memory_space<vmem>>, vector<1x128x32xf32>
    %28 = vector.shape_cast %27 : vector<1x128x32xf32> to vector<128x32xf32>
    %cst_17 = arith.constant dense<0.000000e+00> : vector<16xf32>
    %29 = vector.multi_reduction <add>, %0, %cst_17 [1] : vector<16x32xf32> to vector<16xf32>
    %30 = vector.shape_cast %29 : vector<16xf32> to vector<16x1xf32>
    %cst_18 = arith.constant 3.200000e+01 : f32
    %31 = vector.broadcast %cst_18 : f32 to vector<16x1xf32>
    %32 = arith.divf %30, %31 : vector<16x1xf32>
    %33 = vector.broadcast %32 : vector<16x1xf32> to vector<16x32xf32>
    %34 = arith.subf %0, %33 : vector<16x32xf32>
    %35 = arith.mulf %34, %34 : vector<16x32xf32>
    %cst_19 = arith.constant dense<0.000000e+00> : vector<16xf32>
    %36 = vector.multi_reduction <add>, %35, %cst_19 [1] : vector<16x32xf32> to vector<16xf32>
    %37 = vector.shape_cast %36 : vector<16xf32> to vector<16x1xf32>
    %cst_20 = arith.constant 3.200000e+01 : f32
    %38 = vector.broadcast %cst_20 : f32 to vector<16x1xf32>
    %39 = arith.divf %37, %38 : vector<16x1xf32>
    %cst_21 = arith.constant 9.99999974E-6 : f32
    %40 = vector.broadcast %cst_21 : f32 to vector<16x1xf32>
    %41 = arith.addf %39, %40 : vector<16x1xf32>
    %42 = math.rsqrt %41 : vector<16x1xf32>
    %43 = vector.broadcast %42 : vector<16x1xf32> to vector<16x32xf32>
    %44 = arith.mulf %34, %43 : vector<16x32xf32>
    %45 = vector.broadcast %13 : vector<1x32xf32> to vector<16x32xf32>
    %46 = arith.mulf %44, %45 : vector<16x32xf32>
    %47 = vector.broadcast %14 : vector<1x32xf32> to vector<16x32xf32>
    %48 = arith.addf %46, %47 : vector<16x32xf32>
    %cst_22 = arith.constant dense<0.000000e+00> : vector<16x96xf32>
    %49 = tpu.matmul %48, %22, %cst_22 {dimension_numbers = #tpu.dot_dimension_numbers<[1], [0], [0], [1], [0, 0, 1, 1], [], []>} : vector<16x32xf32>, vector<32x96xf32>, vector<16x96xf32> -> vector<16x96xf32>
    %50 = vector.broadcast %19 : vector<1x96xf32> to vector<16x96xf32>
    %51 = arith.addf %49, %50 : vector<16x96xf32>
    %52 = vector.broadcast %17 : vector<1x32xf32> to vector<16x32xf32>
    %53 = arith.addf %0, %52 : vector<16x32xf32>
    %54 = vector.extract_strided_slice %51 {offsets = [0, 0], sizes = [16, 8], strides = [1, 1]} : vector<16x96xf32> to vector<16x8xf32>
    %55 = vector.extract_strided_slice %51 {offsets = [0, 32], sizes = [16, 8], strides = [1, 1]} : vector<16x96xf32> to vector<16x8xf32>
    %56 = vector.extract_strided_slice %51 {offsets = [0, 64], sizes = [16, 8], strides = [1, 1]} : vector<16x96xf32> to vector<16x8xf32>
    %cst_23 = arith.constant dense<0.000000e+00> : vector<16x16xf32>
    %57 = tpu.matmul %54, %55, %cst_23 {dimension_numbers = #tpu.dot_dimension_numbers<[1], [1], [0], [0], [0, 0, 1, 0], [], []>} : vector<16x8xf32>, vector<16x8xf32>, vector<16x16xf32> -> vector<16x16xf32>
    %58 = arith.addf %57, %10 : vector<16x16xf32>
    %cst_24 = arith.constant dense<0xFF800000> : vector<16xf32>
    %59 = vector.multi_reduction <maximumf>, %58, %cst_24 [1] : vector<16x16xf32> to vector<16xf32>
    %60 = vector.shape_cast %59 : vector<16xf32> to vector<16x1xf32>
    %61 = vector.broadcast %60 : vector<16x1xf32> to vector<16x16xf32>
    %62 = arith.subf %58, %61 : vector<16x16xf32>
    %63 = math.exp %62 : vector<16x16xf32>
    %cst_25 = arith.constant dense<0.000000e+00> : vector<16xf32>
    %64 = vector.multi_reduction <add>, %63, %cst_25 [1] : vector<16x16xf32> to vector<16xf32>
    %65 = vector.shape_cast %64 : vector<16xf32> to vector<16x1xf32>
    %66 = tpu.reciprocal %65 : vector<16x1xf32> -> vector<16x1xf32>
    %67 = vector.broadcast %66 : vector<16x1xf32> to vector<16x16xf32>
    %68 = arith.mulf %63, %67 : vector<16x16xf32>
    %cst_26 = arith.constant dense<0.000000e+00> : vector<16x8xf32>
    %69 = tpu.matmul %68, %56, %cst_26 {dimension_numbers = #tpu.dot_dimension_numbers<[1], [0], [0], [1], [0, 0, 1, 1], [], []>} : vector<16x16xf32>, vector<16x8xf32>, vector<16x8xf32> -> vector<16x8xf32>
    %70 = vector.extract_strided_slice %24 {offsets = [0, 0], sizes = [8, 32], strides = [1, 1]} : vector<32x32xf32> to vector<8x32xf32>
    %cst_27 = arith.constant dense<0.000000e+00> : vector<16x32xf32>
    %71 = tpu.matmul %69, %70, %cst_27 {dimension_numbers = #tpu.dot_dimension_numbers<[1], [0], [0], [1], [0, 0, 1, 1], [], []>} : vector<16x8xf32>, vector<8x32xf32>, vector<16x32xf32> -> vector<16x32xf32>
    %72 = arith.addf %53, %71 : vector<16x32xf32>
    %73 = vector.extract_strided_slice %51 {offsets = [0, 8], sizes = [16, 8], strides = [1, 1]} : vector<16x96xf32> to vector<16x8xf32>
    %74 = vector.extract_strided_slice %51 {offsets = [0, 40], sizes = [16, 8], strides = [1, 1]} : vector<16x96xf32> to vector<16x8xf32>
    %75 = vector.extract_strided_slice %51 {offsets = [0, 72], sizes = [16, 8], strides = [1, 1]} : vector<16x96xf32> to vector<16x8xf32>
    %cst_28 = arith.constant dense<0.000000e+00> : vector<16x16xf32>
    %76 = tpu.matmul %73, %74, %cst_28 {dimension_numbers = #tpu.dot_dimension_numbers<[1], [1], [0], [0], [0, 0, 1, 0], [], []>} : vector<16x8xf32>, vector<16x8xf32>, vector<16x16xf32> -> vector<16x16xf32>
    %77 = arith.addf %76, %10 : vector<16x16xf32>
    %cst_29 = arith.constant dense<0xFF800000> : vector<16xf32>
    %78 = vector.multi_reduction <maximumf>, %77, %cst_29 [1] : vector<16x16xf32> to vector<16xf32>
    %79 = vector.shape_cast %78 : vector<16xf32> to vector<16x1xf32>
    %80 = vector.broadcast %79 : vector<16x1xf32> to vector<16x16xf32>
    %81 = arith.subf %77, %80 : vector<16x16xf32>
    %82 = math.exp %81 : vector<16x16xf32>
    %cst_30 = arith.constant dense<0.000000e+00> : vector<16xf32>
    %83 = vector.multi_reduction <add>, %82, %cst_30 [1] : vector<16x16xf32> to vector<16xf32>
    %84 = vector.shape_cast %83 : vector<16xf32> to vector<16x1xf32>
    %85 = tpu.reciprocal %84 : vector<16x1xf32> -> vector<16x1xf32>
    %86 = vector.broadcast %85 : vector<16x1xf32> to vector<16x16xf32>
    %87 = arith.mulf %82, %86 : vector<16x16xf32>
    %cst_31 = arith.constant dense<0.000000e+00> : vector<16x8xf32>
    %88 = tpu.matmul %87, %75, %cst_31 {dimension_numbers = #tpu.dot_dimension_numbers<[1], [0], [0], [1], [0, 0, 1, 1], [], []>} : vector<16x16xf32>, vector<16x8xf32>, vector<16x8xf32> -> vector<16x8xf32>
    %89 = vector.extract_strided_slice %24 {offsets = [8, 0], sizes = [8, 32], strides = [1, 1]} : vector<32x32xf32> to vector<8x32xf32>
    %cst_32 = arith.constant dense<0.000000e+00> : vector<16x32xf32>
    %90 = tpu.matmul %88, %89, %cst_32 {dimension_numbers = #tpu.dot_dimension_numbers<[1], [0], [0], [1], [0, 0, 1, 1], [], []>} : vector<16x8xf32>, vector<8x32xf32>, vector<16x32xf32> -> vector<16x32xf32>
    %91 = arith.addf %72, %90 : vector<16x32xf32>
    %92 = vector.extract_strided_slice %51 {offsets = [0, 16], sizes = [16, 8], strides = [1, 1]} : vector<16x96xf32> to vector<16x8xf32>
    %93 = vector.extract_strided_slice %51 {offsets = [0, 48], sizes = [16, 8], strides = [1, 1]} : vector<16x96xf32> to vector<16x8xf32>
    %94 = vector.extract_strided_slice %51 {offsets = [0, 80], sizes = [16, 8], strides = [1, 1]} : vector<16x96xf32> to vector<16x8xf32>
    %cst_33 = arith.constant dense<0.000000e+00> : vector<16x16xf32>
    %95 = tpu.matmul %92, %93, %cst_33 {dimension_numbers = #tpu.dot_dimension_numbers<[1], [1], [0], [0], [0, 0, 1, 0], [], []>} : vector<16x8xf32>, vector<16x8xf32>, vector<16x16xf32> -> vector<16x16xf32>
    %96 = arith.addf %95, %10 : vector<16x16xf32>
    %cst_34 = arith.constant dense<0xFF800000> : vector<16xf32>
    %97 = vector.multi_reduction <maximumf>, %96, %cst_34 [1] : vector<16x16xf32> to vector<16xf32>
    %98 = vector.shape_cast %97 : vector<16xf32> to vector<16x1xf32>
    %99 = vector.broadcast %98 : vector<16x1xf32> to vector<16x16xf32>
    %100 = arith.subf %96, %99 : vector<16x16xf32>
    %101 = math.exp %100 : vector<16x16xf32>
    %cst_35 = arith.constant dense<0.000000e+00> : vector<16xf32>
    %102 = vector.multi_reduction <add>, %101, %cst_35 [1] : vector<16x16xf32> to vector<16xf32>
    %103 = vector.shape_cast %102 : vector<16xf32> to vector<16x1xf32>
    %104 = tpu.reciprocal %103 : vector<16x1xf32> -> vector<16x1xf32>
    %105 = vector.broadcast %104 : vector<16x1xf32> to vector<16x16xf32>
    %106 = arith.mulf %101, %105 : vector<16x16xf32>
    %cst_36 = arith.constant dense<0.000000e+00> : vector<16x8xf32>
    %107 = tpu.matmul %106, %94, %cst_36 {dimension_numbers = #tpu.dot_dimension_numbers<[1], [0], [0], [1], [0, 0, 1, 1], [], []>} : vector<16x16xf32>, vector<16x8xf32>, vector<16x8xf32> -> vector<16x8xf32>
    %108 = vector.extract_strided_slice %24 {offsets = [16, 0], sizes = [8, 32], strides = [1, 1]} : vector<32x32xf32> to vector<8x32xf32>
    %cst_37 = arith.constant dense<0.000000e+00> : vector<16x32xf32>
    %109 = tpu.matmul %107, %108, %cst_37 {dimension_numbers = #tpu.dot_dimension_numbers<[1], [0], [0], [1], [0, 0, 1, 1], [], []>} : vector<16x8xf32>, vector<8x32xf32>, vector<16x32xf32> -> vector<16x32xf32>
    %110 = arith.addf %91, %109 : vector<16x32xf32>
    %111 = vector.extract_strided_slice %51 {offsets = [0, 24], sizes = [16, 8], strides = [1, 1]} : vector<16x96xf32> to vector<16x8xf32>
    %112 = vector.extract_strided_slice %51 {offsets = [0, 56], sizes = [16, 8], strides = [1, 1]} : vector<16x96xf32> to vector<16x8xf32>
    %113 = vector.extract_strided_slice %51 {offsets = [0, 88], sizes = [16, 8], strides = [1, 1]} : vector<16x96xf32> to vector<16x8xf32>
    %cst_38 = arith.constant dense<0.000000e+00> : vector<16x16xf32>
    %114 = tpu.matmul %111, %112, %cst_38 {dimension_numbers = #tpu.dot_dimension_numbers<[1], [1], [0], [0], [0, 0, 1, 0], [], []>} : vector<16x8xf32>, vector<16x8xf32>, vector<16x16xf32> -> vector<16x16xf32>
    %115 = arith.addf %114, %10 : vector<16x16xf32>
    %cst_39 = arith.constant dense<0xFF800000> : vector<16xf32>
    %116 = vector.multi_reduction <maximumf>, %115, %cst_39 [1] : vector<16x16xf32> to vector<16xf32>
    %117 = vector.shape_cast %116 : vector<16xf32> to vector<16x1xf32>
    %118 = vector.broadcast %117 : vector<16x1xf32> to vector<16x16xf32>
    %119 = arith.subf %115, %118 : vector<16x16xf32>
    %120 = math.exp %119 : vector<16x16xf32>
    %cst_40 = arith.constant dense<0.000000e+00> : vector<16xf32>
    %121 = vector.multi_reduction <add>, %120, %cst_40 [1] : vector<16x16xf32> to vector<16xf32>
    %122 = vector.shape_cast %121 : vector<16xf32> to vector<16x1xf32>
    %123 = tpu.reciprocal %122 : vector<16x1xf32> -> vector<16x1xf32>
    %124 = vector.broadcast %123 : vector<16x1xf32> to vector<16x16xf32>
    %125 = arith.mulf %120, %124 : vector<16x16xf32>
    %cst_41 = arith.constant dense<0.000000e+00> : vector<16x8xf32>
    %126 = tpu.matmul %125, %113, %cst_41 {dimension_numbers = #tpu.dot_dimension_numbers<[1], [0], [0], [1], [0, 0, 1, 1], [], []>} : vector<16x16xf32>, vector<16x8xf32>, vector<16x8xf32> -> vector<16x8xf32>
    %127 = vector.extract_strided_slice %24 {offsets = [24, 0], sizes = [8, 32], strides = [1, 1]} : vector<32x32xf32> to vector<8x32xf32>
    %cst_42 = arith.constant dense<0.000000e+00> : vector<16x32xf32>
    %128 = tpu.matmul %126, %127, %cst_42 {dimension_numbers = #tpu.dot_dimension_numbers<[1], [0], [0], [1], [0, 0, 1, 1], [], []>} : vector<16x8xf32>, vector<8x32xf32>, vector<16x32xf32> -> vector<16x32xf32>
    %129 = arith.addf %110, %128 : vector<16x32xf32>
    %cst_43 = arith.constant dense<0.000000e+00> : vector<16xf32>
    %130 = vector.multi_reduction <add>, %129, %cst_43 [1] : vector<16x32xf32> to vector<16xf32>
    %131 = vector.shape_cast %130 : vector<16xf32> to vector<16x1xf32>
    %cst_44 = arith.constant 3.200000e+01 : f32
    %132 = vector.broadcast %cst_44 : f32 to vector<16x1xf32>
    %133 = arith.divf %131, %132 : vector<16x1xf32>
    %134 = vector.broadcast %133 : vector<16x1xf32> to vector<16x32xf32>
    %135 = arith.subf %129, %134 : vector<16x32xf32>
    %136 = arith.mulf %135, %135 : vector<16x32xf32>
    %cst_45 = arith.constant dense<0.000000e+00> : vector<16xf32>
    %137 = vector.multi_reduction <add>, %136, %cst_45 [1] : vector<16x32xf32> to vector<16xf32>
    %138 = vector.shape_cast %137 : vector<16xf32> to vector<16x1xf32>
    %cst_46 = arith.constant 3.200000e+01 : f32
    %139 = vector.broadcast %cst_46 : f32 to vector<16x1xf32>
    %140 = arith.divf %138, %139 : vector<16x1xf32>
    %cst_47 = arith.constant 9.99999974E-6 : f32
    %141 = vector.broadcast %cst_47 : f32 to vector<16x1xf32>
    %142 = arith.addf %140, %141 : vector<16x1xf32>
    %143 = math.rsqrt %142 : vector<16x1xf32>
    %144 = vector.broadcast %143 : vector<16x1xf32> to vector<16x32xf32>
    %145 = arith.mulf %135, %144 : vector<16x32xf32>
    %146 = vector.broadcast %15 : vector<1x32xf32> to vector<16x32xf32>
    %147 = arith.mulf %145, %146 : vector<16x32xf32>
    %148 = vector.broadcast %16 : vector<1x32xf32> to vector<16x32xf32>
    %149 = arith.addf %147, %148 : vector<16x32xf32>
    %cst_48 = arith.constant dense<0.000000e+00> : vector<16x128xf32>
    %150 = tpu.matmul %149, %26, %cst_48 {dimension_numbers = #tpu.dot_dimension_numbers<[1], [0], [0], [1], [0, 0, 1, 1], [], []>} : vector<16x32xf32>, vector<32x128xf32>, vector<16x128xf32> -> vector<16x128xf32>
    %151 = vector.broadcast %20 : vector<1x128xf32> to vector<16x128xf32>
    %152 = arith.addf %150, %151 : vector<16x128xf32>
    %cst_49 = arith.constant 1.702000e+00 : f32
    %153 = vector.broadcast %cst_49 : f32 to vector<16x128xf32>
    %154 = arith.mulf %153, %152 : vector<16x128xf32>
    %155 = arith.negf %154 : vector<16x128xf32>
    %156 = math.exp %155 : vector<16x128xf32>
    %cst_50 = arith.constant 1.000000e+00 : f32
    %157 = vector.broadcast %cst_50 : f32 to vector<16x128xf32>
    %158 = arith.addf %157, %156 : vector<16x128xf32>
    %159 = arith.divf %157, %158 : vector<16x128xf32>
    %160 = arith.mulf %152, %159 : vector<16x128xf32>
    %cst_51 = arith.constant dense<0.000000e+00> : vector<16x32xf32>
    %161 = tpu.matmul %160, %28, %cst_51 {dimension_numbers = #tpu.dot_dimension_numbers<[1], [0], [0], [1], [0, 0, 1, 1], [], []>} : vector<16x128xf32>, vector<128x32xf32>, vector<16x32xf32> -> vector<16x32xf32>
    %162 = arith.addf %129, %161 : vector<16x32xf32>
    %163 = vector.broadcast %18 : vector<1x32xf32> to vector<16x32xf32>
    %164 = arith.addf %162, %163 : vector<16x32xf32>
    %c1 = arith.constant 1 : index
    %c0_52 = arith.constant 0 : index
    %c0_53 = arith.constant 0 : index
    %165 = vector.load %arg3[%c1, %c0_52, %c0_53] : memref<2x8x128xf32, #tpu.memory_space<vmem>>, vector<1x8x128xf32>
    %166 = vector.shape_cast %165 : vector<1x8x128xf32> to vector<8x128xf32>
    %167 = vector.extract_strided_slice %166 {offsets = [0, 0], sizes = [1, 32], strides = [1, 1]} : vector<8x128xf32> to vector<1x32xf32>
    %168 = vector.extract_strided_slice %166 {offsets = [1, 0], sizes = [1, 32], strides = [1, 1]} : vector<8x128xf32> to vector<1x32xf32>
    %169 = vector.extract_strided_slice %166 {offsets = [2, 0], sizes = [1, 32], strides = [1, 1]} : vector<8x128xf32> to vector<1x32xf32>
    %170 = vector.extract_strided_slice %166 {offsets = [3, 0], sizes = [1, 32], strides = [1, 1]} : vector<8x128xf32> to vector<1x32xf32>
    %171 = vector.extract_strided_slice %166 {offsets = [4, 0], sizes = [1, 32], strides = [1, 1]} : vector<8x128xf32> to vector<1x32xf32>
    %172 = vector.extract_strided_slice %166 {offsets = [5, 0], sizes = [1, 32], strides = [1, 1]} : vector<8x128xf32> to vector<1x32xf32>
    %173 = vector.extract_strided_slice %166 {offsets = [6, 0], sizes = [1, 96], strides = [1, 1]} : vector<8x128xf32> to vector<1x96xf32>
    %174 = vector.extract_strided_slice %166 {offsets = [7, 0], sizes = [1, 128], strides = [1, 1]} : vector<8x128xf32> to vector<1x128xf32>
    %c1_54 = arith.constant 1 : index
    %c0_55 = arith.constant 0 : index
    %c0_56 = arith.constant 0 : index
    %175 = vector.load %arg4[%c1_54, %c0_55, %c0_56] : memref<2x32x96xf32, #tpu.memory_space<vmem>>, vector<1x32x96xf32>
    %176 = vector.shape_cast %175 : vector<1x32x96xf32> to vector<32x96xf32>
    %c1_57 = arith.constant 1 : index
    %c0_58 = arith.constant 0 : index
    %c0_59 = arith.constant 0 : index
    %177 = vector.load %arg5[%c1_57, %c0_58, %c0_59] : memref<2x32x32xf32, #tpu.memory_space<vmem>>, vector<1x32x32xf32>
    %178 = vector.shape_cast %177 : vector<1x32x32xf32> to vector<32x32xf32>
    %c1_60 = arith.constant 1 : index
    %c0_61 = arith.constant 0 : index
    %c0_62 = arith.constant 0 : index
    %179 = vector.load %arg6[%c1_60, %c0_61, %c0_62] : memref<2x32x128xf32, #tpu.memory_space<vmem>>, vector<1x32x128xf32>
    %180 = vector.shape_cast %179 : vector<1x32x128xf32> to vector<32x128xf32>
    %c1_63 = arith.constant 1 : index
    %c0_64 = arith.constant 0 : index
    %c0_65 = arith.constant 0 : index
    %181 = vector.load %arg7[%c1_63, %c0_64, %c0_65] : memref<2x128x32xf32, #tpu.memory_space<vmem>>, vector<1x128x32xf32>
    %182 = vector.shape_cast %181 : vector<1x128x32xf32> to vector<128x32xf32>
    %cst_66 = arith.constant dense<0.000000e+00> : vector<16xf32>
    %183 = vector.multi_reduction <add>, %164, %cst_66 [1] : vector<16x32xf32> to vector<16xf32>
    %184 = vector.shape_cast %183 : vector<16xf32> to vector<16x1xf32>
    %cst_67 = arith.constant 3.200000e+01 : f32
    %185 = vector.broadcast %cst_67 : f32 to vector<16x1xf32>
    %186 = arith.divf %184, %185 : vector<16x1xf32>
    %187 = vector.broadcast %186 : vector<16x1xf32> to vector<16x32xf32>
    %188 = arith.subf %164, %187 : vector<16x32xf32>
    %189 = arith.mulf %188, %188 : vector<16x32xf32>
    %cst_68 = arith.constant dense<0.000000e+00> : vector<16xf32>
    %190 = vector.multi_reduction <add>, %189, %cst_68 [1] : vector<16x32xf32> to vector<16xf32>
    %191 = vector.shape_cast %190 : vector<16xf32> to vector<16x1xf32>
    %cst_69 = arith.constant 3.200000e+01 : f32
    %192 = vector.broadcast %cst_69 : f32 to vector<16x1xf32>
    %193 = arith.divf %191, %192 : vector<16x1xf32>
    %cst_70 = arith.constant 9.99999974E-6 : f32
    %194 = vector.broadcast %cst_70 : f32 to vector<16x1xf32>
    %195 = arith.addf %193, %194 : vector<16x1xf32>
    %196 = math.rsqrt %195 : vector<16x1xf32>
    %197 = vector.broadcast %196 : vector<16x1xf32> to vector<16x32xf32>
    %198 = arith.mulf %188, %197 : vector<16x32xf32>
    %199 = vector.broadcast %167 : vector<1x32xf32> to vector<16x32xf32>
    %200 = arith.mulf %198, %199 : vector<16x32xf32>
    %201 = vector.broadcast %168 : vector<1x32xf32> to vector<16x32xf32>
    %202 = arith.addf %200, %201 : vector<16x32xf32>
    %cst_71 = arith.constant dense<0.000000e+00> : vector<16x96xf32>
    %203 = tpu.matmul %202, %176, %cst_71 {dimension_numbers = #tpu.dot_dimension_numbers<[1], [0], [0], [1], [0, 0, 1, 1], [], []>} : vector<16x32xf32>, vector<32x96xf32>, vector<16x96xf32> -> vector<16x96xf32>
    %204 = vector.broadcast %173 : vector<1x96xf32> to vector<16x96xf32>
    %205 = arith.addf %203, %204 : vector<16x96xf32>
    %206 = vector.broadcast %171 : vector<1x32xf32> to vector<16x32xf32>
    %207 = arith.addf %164, %206 : vector<16x32xf32>
    %208 = vector.extract_strided_slice %205 {offsets = [0, 0], sizes = [16, 8], strides = [1, 1]} : vector<16x96xf32> to vector<16x8xf32>
    %209 = vector.extract_strided_slice %205 {offsets = [0, 32], sizes = [16, 8], strides = [1, 1]} : vector<16x96xf32> to vector<16x8xf32>
    %210 = vector.extract_strided_slice %205 {offsets = [0, 64], sizes = [16, 8], strides = [1, 1]} : vector<16x96xf32> to vector<16x8xf32>
    %cst_72 = arith.constant dense<0.000000e+00> : vector<16x16xf32>
    %211 = tpu.matmul %208, %209, %cst_72 {dimension_numbers = #tpu.dot_dimension_numbers<[1], [1], [0], [0], [0, 0, 1, 0], [], []>} : vector<16x8xf32>, vector<16x8xf32>, vector<16x16xf32> -> vector<16x16xf32>
    %212 = arith.addf %211, %10 : vector<16x16xf32>
    %cst_73 = arith.constant dense<0xFF800000> : vector<16xf32>
    %213 = vector.multi_reduction <maximumf>, %212, %cst_73 [1] : vector<16x16xf32> to vector<16xf32>
    %214 = vector.shape_cast %213 : vector<16xf32> to vector<16x1xf32>
    %215 = vector.broadcast %214 : vector<16x1xf32> to vector<16x16xf32>
    %216 = arith.subf %212, %215 : vector<16x16xf32>
    %217 = math.exp %216 : vector<16x16xf32>
    %cst_74 = arith.constant dense<0.000000e+00> : vector<16xf32>
    %218 = vector.multi_reduction <add>, %217, %cst_74 [1] : vector<16x16xf32> to vector<16xf32>
    %219 = vector.shape_cast %218 : vector<16xf32> to vector<16x1xf32>
    %220 = tpu.reciprocal %219 : vector<16x1xf32> -> vector<16x1xf32>
    %221 = vector.broadcast %220 : vector<16x1xf32> to vector<16x16xf32>
    %222 = arith.mulf %217, %221 : vector<16x16xf32>
    %cst_75 = arith.constant dense<0.000000e+00> : vector<16x8xf32>
    %223 = tpu.matmul %222, %210, %cst_75 {dimension_numbers = #tpu.dot_dimension_numbers<[1], [0], [0], [1], [0, 0, 1, 1], [], []>} : vector<16x16xf32>, vector<16x8xf32>, vector<16x8xf32> -> vector<16x8xf32>
    %224 = vector.extract_strided_slice %178 {offsets = [0, 0], sizes = [8, 32], strides = [1, 1]} : vector<32x32xf32> to vector<8x32xf32>
    %cst_76 = arith.constant dense<0.000000e+00> : vector<16x32xf32>
    %225 = tpu.matmul %223, %224, %cst_76 {dimension_numbers = #tpu.dot_dimension_numbers<[1], [0], [0], [1], [0, 0, 1, 1], [], []>} : vector<16x8xf32>, vector<8x32xf32>, vector<16x32xf32> -> vector<16x32xf32>
    %226 = arith.addf %207, %225 : vector<16x32xf32>
    %227 = vector.extract_strided_slice %205 {offsets = [0, 8], sizes = [16, 8], strides = [1, 1]} : vector<16x96xf32> to vector<16x8xf32>
    %228 = vector.extract_strided_slice %205 {offsets = [0, 40], sizes = [16, 8], strides = [1, 1]} : vector<16x96xf32> to vector<16x8xf32>
    %229 = vector.extract_strided_slice %205 {offsets = [0, 72], sizes = [16, 8], strides = [1, 1]} : vector<16x96xf32> to vector<16x8xf32>
    %cst_77 = arith.constant dense<0.000000e+00> : vector<16x16xf32>
    %230 = tpu.matmul %227, %228, %cst_77 {dimension_numbers = #tpu.dot_dimension_numbers<[1], [1], [0], [0], [0, 0, 1, 0], [], []>} : vector<16x8xf32>, vector<16x8xf32>, vector<16x16xf32> -> vector<16x16xf32>
    %231 = arith.addf %230, %10 : vector<16x16xf32>
    %cst_78 = arith.constant dense<0xFF800000> : vector<16xf32>
    %232 = vector.multi_reduction <maximumf>, %231, %cst_78 [1] : vector<16x16xf32> to vector<16xf32>
    %233 = vector.shape_cast %232 : vector<16xf32> to vector<16x1xf32>
    %234 = vector.broadcast %233 : vector<16x1xf32> to vector<16x16xf32>
    %235 = arith.subf %231, %234 : vector<16x16xf32>
    %236 = math.exp %235 : vector<16x16xf32>
    %cst_79 = arith.constant dense<0.000000e+00> : vector<16xf32>
    %237 = vector.multi_reduction <add>, %236, %cst_79 [1] : vector<16x16xf32> to vector<16xf32>
    %238 = vector.shape_cast %237 : vector<16xf32> to vector<16x1xf32>
    %239 = tpu.reciprocal %238 : vector<16x1xf32> -> vector<16x1xf32>
    %240 = vector.broadcast %239 : vector<16x1xf32> to vector<16x16xf32>
    %241 = arith.mulf %236, %240 : vector<16x16xf32>
    %cst_80 = arith.constant dense<0.000000e+00> : vector<16x8xf32>
    %242 = tpu.matmul %241, %229, %cst_80 {dimension_numbers = #tpu.dot_dimension_numbers<[1], [0], [0], [1], [0, 0, 1, 1], [], []>} : vector<16x16xf32>, vector<16x8xf32>, vector<16x8xf32> -> vector<16x8xf32>
    %243 = vector.extract_strided_slice %178 {offsets = [8, 0], sizes = [8, 32], strides = [1, 1]} : vector<32x32xf32> to vector<8x32xf32>
    %cst_81 = arith.constant dense<0.000000e+00> : vector<16x32xf32>
    %244 = tpu.matmul %242, %243, %cst_81 {dimension_numbers = #tpu.dot_dimension_numbers<[1], [0], [0], [1], [0, 0, 1, 1], [], []>} : vector<16x8xf32>, vector<8x32xf32>, vector<16x32xf32> -> vector<16x32xf32>
    %245 = arith.addf %226, %244 : vector<16x32xf32>
    %246 = vector.extract_strided_slice %205 {offsets = [0, 16], sizes = [16, 8], strides = [1, 1]} : vector<16x96xf32> to vector<16x8xf32>
    %247 = vector.extract_strided_slice %205 {offsets = [0, 48], sizes = [16, 8], strides = [1, 1]} : vector<16x96xf32> to vector<16x8xf32>
    %248 = vector.extract_strided_slice %205 {offsets = [0, 80], sizes = [16, 8], strides = [1, 1]} : vector<16x96xf32> to vector<16x8xf32>
    %cst_82 = arith.constant dense<0.000000e+00> : vector<16x16xf32>
    %249 = tpu.matmul %246, %247, %cst_82 {dimension_numbers = #tpu.dot_dimension_numbers<[1], [1], [0], [0], [0, 0, 1, 0], [], []>} : vector<16x8xf32>, vector<16x8xf32>, vector<16x16xf32> -> vector<16x16xf32>
    %250 = arith.addf %249, %10 : vector<16x16xf32>
    %cst_83 = arith.constant dense<0xFF800000> : vector<16xf32>
    %251 = vector.multi_reduction <maximumf>, %250, %cst_83 [1] : vector<16x16xf32> to vector<16xf32>
    %252 = vector.shape_cast %251 : vector<16xf32> to vector<16x1xf32>
    %253 = vector.broadcast %252 : vector<16x1xf32> to vector<16x16xf32>
    %254 = arith.subf %250, %253 : vector<16x16xf32>
    %255 = math.exp %254 : vector<16x16xf32>
    %cst_84 = arith.constant dense<0.000000e+00> : vector<16xf32>
    %256 = vector.multi_reduction <add>, %255, %cst_84 [1] : vector<16x16xf32> to vector<16xf32>
    %257 = vector.shape_cast %256 : vector<16xf32> to vector<16x1xf32>
    %258 = tpu.reciprocal %257 : vector<16x1xf32> -> vector<16x1xf32>
    %259 = vector.broadcast %258 : vector<16x1xf32> to vector<16x16xf32>
    %260 = arith.mulf %255, %259 : vector<16x16xf32>
    %cst_85 = arith.constant dense<0.000000e+00> : vector<16x8xf32>
    %261 = tpu.matmul %260, %248, %cst_85 {dimension_numbers = #tpu.dot_dimension_numbers<[1], [0], [0], [1], [0, 0, 1, 1], [], []>} : vector<16x16xf32>, vector<16x8xf32>, vector<16x8xf32> -> vector<16x8xf32>
    %262 = vector.extract_strided_slice %178 {offsets = [16, 0], sizes = [8, 32], strides = [1, 1]} : vector<32x32xf32> to vector<8x32xf32>
    %cst_86 = arith.constant dense<0.000000e+00> : vector<16x32xf32>
    %263 = tpu.matmul %261, %262, %cst_86 {dimension_numbers = #tpu.dot_dimension_numbers<[1], [0], [0], [1], [0, 0, 1, 1], [], []>} : vector<16x8xf32>, vector<8x32xf32>, vector<16x32xf32> -> vector<16x32xf32>
    %264 = arith.addf %245, %263 : vector<16x32xf32>
    %265 = vector.extract_strided_slice %205 {offsets = [0, 24], sizes = [16, 8], strides = [1, 1]} : vector<16x96xf32> to vector<16x8xf32>
    %266 = vector.extract_strided_slice %205 {offsets = [0, 56], sizes = [16, 8], strides = [1, 1]} : vector<16x96xf32> to vector<16x8xf32>
    %267 = vector.extract_strided_slice %205 {offsets = [0, 88], sizes = [16, 8], strides = [1, 1]} : vector<16x96xf32> to vector<16x8xf32>
    %cst_87 = arith.constant dense<0.000000e+00> : vector<16x16xf32>
    %268 = tpu.matmul %265, %266, %cst_87 {dimension_numbers = #tpu.dot_dimension_numbers<[1], [1], [0], [0], [0, 0, 1, 0], [], []>} : vector<16x8xf32>, vector<16x8xf32>, vector<16x16xf32> -> vector<16x16xf32>
    %269 = arith.addf %268, %10 : vector<16x16xf32>
    %cst_88 = arith.constant dense<0xFF800000> : vector<16xf32>
    %270 = vector.multi_reduction <maximumf>, %269, %cst_88 [1] : vector<16x16xf32> to vector<16xf32>
    %271 = vector.shape_cast %270 : vector<16xf32> to vector<16x1xf32>
    %272 = vector.broadcast %271 : vector<16x1xf32> to vector<16x16xf32>
    %273 = arith.subf %269, %272 : vector<16x16xf32>
    %274 = math.exp %273 : vector<16x16xf32>
    %cst_89 = arith.constant dense<0.000000e+00> : vector<16xf32>
    %275 = vector.multi_reduction <add>, %274, %cst_89 [1] : vector<16x16xf32> to vector<16xf32>
    %276 = vector.shape_cast %275 : vector<16xf32> to vector<16x1xf32>
    %277 = tpu.reciprocal %276 : vector<16x1xf32> -> vector<16x1xf32>
    %278 = vector.broadcast %277 : vector<16x1xf32> to vector<16x16xf32>
    %279 = arith.mulf %274, %278 : vector<16x16xf32>
    %cst_90 = arith.constant dense<0.000000e+00> : vector<16x8xf32>
    %280 = tpu.matmul %279, %267, %cst_90 {dimension_numbers = #tpu.dot_dimension_numbers<[1], [0], [0], [1], [0, 0, 1, 1], [], []>} : vector<16x16xf32>, vector<16x8xf32>, vector<16x8xf32> -> vector<16x8xf32>
    %281 = vector.extract_strided_slice %178 {offsets = [24, 0], sizes = [8, 32], strides = [1, 1]} : vector<32x32xf32> to vector<8x32xf32>
    %cst_91 = arith.constant dense<0.000000e+00> : vector<16x32xf32>
    %282 = tpu.matmul %280, %281, %cst_91 {dimension_numbers = #tpu.dot_dimension_numbers<[1], [0], [0], [1], [0, 0, 1, 1], [], []>} : vector<16x8xf32>, vector<8x32xf32>, vector<16x32xf32> -> vector<16x32xf32>
    %283 = arith.addf %264, %282 : vector<16x32xf32>
    %cst_92 = arith.constant dense<0.000000e+00> : vector<16xf32>
    %284 = vector.multi_reduction <add>, %283, %cst_92 [1] : vector<16x32xf32> to vector<16xf32>
    %285 = vector.shape_cast %284 : vector<16xf32> to vector<16x1xf32>
    %cst_93 = arith.constant 3.200000e+01 : f32
    %286 = vector.broadcast %cst_93 : f32 to vector<16x1xf32>
    %287 = arith.divf %285, %286 : vector<16x1xf32>
    %288 = vector.broadcast %287 : vector<16x1xf32> to vector<16x32xf32>
    %289 = arith.subf %283, %288 : vector<16x32xf32>
    %290 = arith.mulf %289, %289 : vector<16x32xf32>
    %cst_94 = arith.constant dense<0.000000e+00> : vector<16xf32>
    %291 = vector.multi_reduction <add>, %290, %cst_94 [1] : vector<16x32xf32> to vector<16xf32>
    %292 = vector.shape_cast %291 : vector<16xf32> to vector<16x1xf32>
    %cst_95 = arith.constant 3.200000e+01 : f32
    %293 = vector.broadcast %cst_95 : f32 to vector<16x1xf32>
    %294 = arith.divf %292, %293 : vector<16x1xf32>
    %cst_96 = arith.constant 9.99999974E-6 : f32
    %295 = vector.broadcast %cst_96 : f32 to vector<16x1xf32>
    %296 = arith.addf %294, %295 : vector<16x1xf32>
    %297 = math.rsqrt %296 : vector<16x1xf32>
    %298 = vector.broadcast %297 : vector<16x1xf32> to vector<16x32xf32>
    %299 = arith.mulf %289, %298 : vector<16x32xf32>
    %300 = vector.broadcast %169 : vector<1x32xf32> to vector<16x32xf32>
    %301 = arith.mulf %299, %300 : vector<16x32xf32>
    %302 = vector.broadcast %170 : vector<1x32xf32> to vector<16x32xf32>
    %303 = arith.addf %301, %302 : vector<16x32xf32>
    %cst_97 = arith.constant dense<0.000000e+00> : vector<16x128xf32>
    %304 = tpu.matmul %303, %180, %cst_97 {dimension_numbers = #tpu.dot_dimension_numbers<[1], [0], [0], [1], [0, 0, 1, 1], [], []>} : vector<16x32xf32>, vector<32x128xf32>, vector<16x128xf32> -> vector<16x128xf32>
    %305 = vector.broadcast %174 : vector<1x128xf32> to vector<16x128xf32>
    %306 = arith.addf %304, %305 : vector<16x128xf32>
    %cst_98 = arith.constant 1.702000e+00 : f32
    %307 = vector.broadcast %cst_98 : f32 to vector<16x128xf32>
    %308 = arith.mulf %307, %306 : vector<16x128xf32>
    %309 = arith.negf %308 : vector<16x128xf32>
    %310 = math.exp %309 : vector<16x128xf32>
    %cst_99 = arith.constant 1.000000e+00 : f32
    %311 = vector.broadcast %cst_99 : f32 to vector<16x128xf32>
    %312 = arith.addf %311, %310 : vector<16x128xf32>
    %313 = arith.divf %311, %312 : vector<16x128xf32>
    %314 = arith.mulf %306, %313 : vector<16x128xf32>
    %cst_100 = arith.constant dense<0.000000e+00> : vector<16x32xf32>
    %315 = tpu.matmul %314, %182, %cst_100 {dimension_numbers = #tpu.dot_dimension_numbers<[1], [0], [0], [1], [0, 0, 1, 1], [], []>} : vector<16x128xf32>, vector<128x32xf32>, vector<16x32xf32> -> vector<16x32xf32>
    %316 = arith.addf %283, %315 : vector<16x32xf32>
    %317 = vector.broadcast %172 : vector<1x32xf32> to vector<16x32xf32>
    %318 = arith.addf %316, %317 : vector<16x32xf32>
    %c0_101 = arith.constant 0 : index
    %c0_102 = arith.constant 0 : index
    %319 = vector.load %arg8[%c0_101, %c0_102] : memref<2x32xf32, #tpu.memory_space<vmem>>, vector<2x32xf32>
    %320 = vector.extract_strided_slice %319 {offsets = [0, 0], sizes = [1, 32], strides = [1, 1]} : vector<2x32xf32> to vector<1x32xf32>
    %321 = vector.extract_strided_slice %319 {offsets = [1, 0], sizes = [1, 32], strides = [1, 1]} : vector<2x32xf32> to vector<1x32xf32>
    %cst_103 = arith.constant dense<0.000000e+00> : vector<16xf32>
    %322 = vector.multi_reduction <add>, %318, %cst_103 [1] : vector<16x32xf32> to vector<16xf32>
    %323 = vector.shape_cast %322 : vector<16xf32> to vector<16x1xf32>
    %cst_104 = arith.constant 3.200000e+01 : f32
    %324 = vector.broadcast %cst_104 : f32 to vector<16x1xf32>
    %325 = arith.divf %323, %324 : vector<16x1xf32>
    %326 = vector.broadcast %325 : vector<16x1xf32> to vector<16x32xf32>
    %327 = arith.subf %318, %326 : vector<16x32xf32>
    %328 = arith.mulf %327, %327 : vector<16x32xf32>
    %cst_105 = arith.constant dense<0.000000e+00> : vector<16xf32>
    %329 = vector.multi_reduction <add>, %328, %cst_105 [1] : vector<16x32xf32> to vector<16xf32>
    %330 = vector.shape_cast %329 : vector<16xf32> to vector<16x1xf32>
    %cst_106 = arith.constant 3.200000e+01 : f32
    %331 = vector.broadcast %cst_106 : f32 to vector<16x1xf32>
    %332 = arith.divf %330, %331 : vector<16x1xf32>
    %cst_107 = arith.constant 9.99999974E-6 : f32
    %333 = vector.broadcast %cst_107 : f32 to vector<16x1xf32>
    %334 = arith.addf %332, %333 : vector<16x1xf32>
    %335 = math.rsqrt %334 : vector<16x1xf32>
    %336 = vector.broadcast %335 : vector<16x1xf32> to vector<16x32xf32>
    %337 = arith.mulf %327, %336 : vector<16x32xf32>
    %338 = vector.broadcast %320 : vector<1x32xf32> to vector<16x32xf32>
    %339 = arith.mulf %337, %338 : vector<16x32xf32>
    %340 = vector.broadcast %321 : vector<1x32xf32> to vector<16x32xf32>
    %341 = arith.addf %339, %340 : vector<16x32xf32>
    %c0_i32 = arith.constant 0 : i32
    %342 = vector.broadcast %c0_i32 : i32 to vector<1x16xi32>
    %c0_108 = arith.constant 0 : index
    %343 = memref.load %arg1[%c0_108] : memref<2xi32, #tpu.memory_space<smem>>
    %c0_i32_109 = arith.constant 0 : i32
    %344 = arith.addi %c0_i32_109, %343 : i32
    %345 = vector.broadcast %344 : i32 to vector<1x16xi32>
    %346 = arith.addi %342, %345 : vector<1x16xi32>
    %c0_i32_110 = arith.constant 0 : i32
    %347 = vector.broadcast %c0_i32_110 : i32 to vector<1x16xi32>
    %c1_111 = arith.constant 1 : index
    %348 = memref.load %arg1[%c1_111] : memref<2xi32, #tpu.memory_space<smem>>
    %c8_i32_112 = arith.constant 8 : i32
    %349 = arith.addi %c8_i32_112, %348 : i32
    %350 = vector.broadcast %349 : i32 to vector<1x16xi32>
    %351 = arith.addi %347, %350 : vector<1x16xi32>
    %c-1_i32 = arith.constant -1 : i32
    %352 = vector.broadcast %c-1_i32 : i32 to vector<6x16xi32>
    %353 = tpu.concatenate %346, %351, %352 in 0 : vector<1x16xi32>, vector<1x16xi32>, vector<6x16xi32> -> vector<8x16xi32>
    %354 = tpu.iota {dimensions = array<i32: 1>} : vector<8x16xi32>
    %355 = arith.cmpi eq, %354, %353 : vector<8x16xi32>
    %356 = arith.extui %355 : vector<8x16xi1> to vector<8x16xi32>
    %357 = arith.sitofp %356 : vector<8x16xi32> to vector<8x16xf32>
    %cst_113 = arith.constant dense<0.000000e+00> : vector<8x32xf32>
    %358 = tpu.matmul %357, %341, %cst_113 {dimension_numbers = #tpu.dot_dimension_numbers<[1], [0], [0], [1], [0, 0, 1, 1], [], []>} : vector<8x16xf32>, vector<16x32xf32>, vector<8x32xf32> -> vector<8x32xf32>
    %c0_114 = arith.constant 0 : index
    %c0_115 = arith.constant 0 : index
    %359 = vector.load %arg9[%c0_114, %c0_115] : memref<32x16xf32, #tpu.memory_space<vmem>>, vector<32x16xf32>
    %cst_116 = arith.constant dense<0.000000e+00> : vector<8x16xf32>
    %360 = tpu.matmul %358, %359, %cst_116 {dimension_numbers = #tpu.dot_dimension_numbers<[1], [0], [0], [1], [0, 0, 1, 1], [], []>} : vector<8x32xf32>, vector<32x16xf32>, vector<8x16xf32> -> vector<8x16xf32>
    %cst_117 = arith.constant 0.000000e+00 : f32
    %361 = vector.broadcast %cst_117 : f32 to vector<16x96xf32>
    %362 = tpu.concatenate %341, %361 in 1 : vector<16x32xf32>, vector<16x96xf32> -> vector<16x128xf32>
    %cst_118 = arith.constant 0.000000e+00 : f32
    %363 = vector.broadcast %cst_118 : f32 to vector<8x112xf32>
    %364 = tpu.concatenate %360, %363 in 1 : vector<8x16xf32>, vector<8x112xf32> -> vector<8x128xf32>
    %365 = tpu.concatenate %362, %364 in 0 : vector<16x128xf32>, vector<8x128xf32> -> vector<24x128xf32>
    %c0_119 = arith.constant 0 : index
    %c0_120 = arith.constant 0 : index
    %366 = vector.load %arg10[%c0_119, %c0_120] : memref<24x128xf32, #tpu.memory_space<vmem>>, vector<24x128xf32>
    tpu.vector_store %arg10[%c0_119, %c0_120], %365 {strides = array<i32>} : memref<24x128xf32, #tpu.memory_space<vmem>>, vector<24x128xf32>,
    return
  }
  func.func @transform_0(%arg0: i32, %arg1: memref<2xi32, #tpu.memory_space<smem>>) -> (i32, i32) {
    %c0_i32 = arith.constant 0 : i32
    %c0_i32_0 = arith.constant 0 : i32
    %c0_i32_1 = arith.constant 0 : i32
    return %c0_i32, %c0_i32_0 : i32, i32
  }
  func.func @transform_1(%arg0: i32, %arg1: memref<2xi32, #tpu.memory_space<smem>>) -> (i32, i32, i32) {
    %c0_i32 = arith.constant 0 : i32
    %c0_i32_0 = arith.constant 0 : i32
    %c0_i32_1 = arith.constant 0 : i32
    %c0_i32_2 = arith.constant 0 : i32
    return %c0_i32, %c0_i32_0, %c0_i32_1 : i32, i32, i32
  }
  func.func @transform_2(%arg0: i32, %arg1: memref<2xi32, #tpu.memory_space<smem>>) -> (i32, i32, i32) {
    %c0_i32 = arith.constant 0 : i32
    %c0_i32_0 = arith.constant 0 : i32
    %c0_i32_1 = arith.constant 0 : i32
    %c0_i32_2 = arith.constant 0 : i32
    return %c0_i32, %c0_i32_0, %c0_i32_1 : i32, i32, i32
  }
  func.func @transform_3(%arg0: i32, %arg1: memref<2xi32, #tpu.memory_space<smem>>) -> (i32, i32, i32) {
    %c0_i32 = arith.constant 0 : i32
    %c0_i32_0 = arith.constant 0 : i32
    %c0_i32_1 = arith.constant 0 : i32
    %c0_i32_2 = arith.constant 0 : i32
    return %c0_i32, %c0_i32_0, %c0_i32_1 : i32, i32, i32
  }
  func.func @transform_4(%arg0: i32, %arg1: memref<2xi32, #tpu.memory_space<smem>>) -> (i32, i32, i32) {
    %c0_i32 = arith.constant 0 : i32
    %c0_i32_0 = arith.constant 0 : i32
    %c0_i32_1 = arith.constant 0 : i32
    %c0_i32_2 = arith.constant 0 : i32
    return %c0_i32, %c0_i32_0, %c0_i32_1 : i32, i32, i32
  }
  func.func @transform_5(%arg0: i32, %arg1: memref<2xi32, #tpu.memory_space<smem>>) -> (i32, i32, i32) {
    %c0_i32 = arith.constant 0 : i32
    %c0_i32_0 = arith.constant 0 : i32
    %c0_i32_1 = arith.constant 0 : i32
    %c0_i32_2 = arith.constant 0 : i32
    return %c0_i32, %c0_i32_0, %c0_i32_1 : i32, i32, i32
  }
  func.func @transform_6(%arg0: i32, %arg1: memref<2xi32, #tpu.memory_space<smem>>) -> (i32, i32) {
    %c0_i32 = arith.constant 0 : i32
    %c0_i32_0 = arith.constant 0 : i32
    %c0_i32_1 = arith.constant 0 : i32
    return %c0_i32, %c0_i32_0 : i32, i32
  }
  func.func @transform_7(%arg0: i32, %arg1: memref<2xi32, #tpu.memory_space<smem>>) -> (i32, i32) {
    %c0_i32 = arith.constant 0 : i32
    %c0_i32_0 = arith.constant 0 : i32
    %c0_i32_1 = arith.constant 0 : i32
    return %c0_i32, %c0_i32_0 : i32, i32
  }
  func.func @transform_8(%arg0: i32, %arg1: memref<2xi32, #tpu.memory_space<smem>>) -> (i32, i32) {
    %c0_i32 = arith.constant 0 : i32
    %c0_i32_0 = arith.constant 0 : i32
    %c0_i32_1 = arith.constant 0 : i32
    return %c0_i32, %c0_i32_0 : i32, i32
  }
}

</mosaic_0001>

<bundles_post_ra>
// kernel: text_clip_forward.1
= control target key start
LH: loop header
LB: loop body
LE: loop exit
PB: predicated region body
PF: predicated region fallthrough
CT: control target
= control target key end

     0   :  { %s4893_s0 = inlined_call_operand.vmem [shape: s32[2], index: 0, kind: input, shape index: {}]   ;;  %s4894_s1 = inlined_call_operand.vmem [shape: f32[16,32], index: 1, kind: input, shape index: {}]   ;;  %s4895_s2 = inlined_call_operand.vmem [shape: f32[2,8,128], index: 2, kind: input, shape index: {}]   ;;  %s4896_s3 = inlined_call_operand.vmem [shape: f32[2,32,96], index: 3, kind: input, shape index: {}]   ;;  %s4897_s4 = inlined_call_operand.vmem [shape: f32[2,32,32], index: 4, kind: input, shape index: {}]   ;;  %s4898_s5 = inlined_call_operand.vmem [shape: f32[2,32,128], index: 5, kind: input, shape index: {}]   ;;  %s4899_s6 = inlined_call_operand.vmem [shape: f32[2,128,32], index: 6, kind: input, shape index: {}]   ;;  %s4900_s7 = inlined_call_operand.vmem [shape: f32[2,32], index: 7, kind: input, shape index: {}]   ;;  %s4901_s8 = inlined_call_operand.vmem [shape: f32[32,16], index: 8, kind: input, shape index: {}]   ;;  %s4902_s9 = inlined_call_operand.vmem [shape: f32[24,128], index: 9, kind: output, shape index: {}]  }
   0x1   :  { %s14_s11 = sshll.u32 %s4893_s0, 4  ;;  %s15_s11 = int_to_ptr.vmem [resolvable:$true] %s14_s11 }
   0x2   :  { %s4239_s12 = scalar_lea.vmem %s15_s11, 16  ;;  %p4244_p1 = scmp.lt.s32.totalorder %s15_s11, %s15_s11 }
   0x3   :  { %p4240_p0 = scmp.ne.s32.totalorder %s15_s11, %s4239_s12  ;;  %p4245_p2 = scmp.lt.s32.totalorder %s4239_s12, %s4239_s12 }
   0x5   :  { %p4246_p3 = por %p4245_p2, %p4244_p1 }
   0x7   :  { %p4247_p4 = pnand %p4246_p3, %p4240_p0 }
   0x9   :  { %4250 = shalt.err (!%p4247_p4)  }
   0xa   :  { %s4253_s13 = smov [#allocation3]  }
   0xb   :  { %17 = dma.vmem_to_smem %s15_s11, 16, %s4253_s13, [#allocation2] }
   0xc   :  { %4251 = dma.done.wait [#allocation2], 16 }
   0xd   :  { %4252 = vsyncadd [#allocation2], 4294967280 }
   0xe   :  { %19 = sfence }
   0xf   :  { %v4325_v0 = vld [vmem:[%s4894_s1] sm:$0xff]  ;;  %vm82_vm0 = vcmask 261120   ;;  %v4330_v1 = vld [vmem:[%s4894_s1 + $0x8] sm:$0xff]  ;;  %v56_v16 = vld [vmem:[%s4896_s3 + $0x10] sm:$0xff]  ;;  %v38_v22 = vlaneseq  ;;  %vm219_vm1 = vcmask 64512   ;;  %s4254_s26 = smov 96  }
  0x10   :  { %v83_v2 = vsel %vm82_vm0, %v4325_v0, 0.0  ;;  %v86_v3 = vsel %vm82_vm0, %v4330_v1, 0.0  ;;  %v54_v14 = vld [vmem:[%s4896_s3] sm:$0xff]  ;;  %v55_v15 = vld [vmem:[%s4896_s3 + $0x8] sm:$0xff]  ;;  %v57_v18 = vld [vmem:[%s4896_s3 + $0x18] sm:$0xff]  ;;  %s4255_s27 = smov 88  }
  0x11   :  { %84 = vadd.xlane.f32.xlu0 %v83_v2  ;;  %v3842_v17 = vpack.c.bf16 %v55_v15, %v54_v14  ;;  %v3846_v19 = vpack.c.bf16 %v57_v18, %v56_v16  ;;  %v4352_v26 = vshrl.u32 %v38_v22, 7  ;;  %v4360_v29 = vld [vmem:[%s4895_s2] sm:$0xff]  ;;  %s4256_s28 = smov 120   ;;  %s4257_s29 = smov 112   ;;  %vm4397_vm2 = vmpackc.low %vm219_vm1, %vm219_vm1  ;;  %v4407_v53 = vand.u32 127, %v38_v22 }
  0x12   :  { %v4258_v57 = vmov -1e+09   ;;  %vm303_vm9 = vcmask 130048   ;;  %s4259_s30 = smov 64   ;;  %s4260_s10 = smov 80   ;;  %vm4267_vm10 = vmmov 0  }
  0x13   :  { %3843 = vmatprep.subr.bf16.mxu1 %v3842_v17  ;;  %v4355_v28 = vsub.s32 0, %v4352_v26  ;;  %v4363_v30 = vsub.s32 1, %v4352_v26  ;;  %v124_v41 = vsub.s32 6, %v4352_v26  ;;  %v40_v54 = vadd.s32 8, %v4352_v26  ;;  %s4261_s13 = smov 72   ;;  %s4262_s14 = smov 104  }
  0x14   :  { %3845 = vmatpush3.bf16.msra.mxu1 %v3842_v17  ;;  %v43_v55 = vxor.u32 %v4407_v53, %v4352_v26  ;;  %vm47_vm4 = vcmp.le.s32.totalorder %v4407_v53, %v4352_v26  ;;  %s4263_s15 = smov 56   ;;  %s4264_s1 = smov 48   ;;  %vm3126_vm11 = vcmask 1040384   ;;  %vm3128_vm12 = vcmask 1041408  }
  0x15   :  { %87 = vadd.xlane.f32.xlu0 %v86_v3  ;;  %3847 = vmatprep.subr.bf16.mxu1 %v3846_v19  ;;  %v113_v31 = vrot.slane %v4360_v29, %v4355_v28  ;;  %v119_v34 = vrot.slane %v4360_v29, %v4363_v30  ;;  %v125_v42 = vrot.slane %v4360_v29, %v124_v41  ;;  %s4265_s17 = smov 40   ;;  %s3121_s18 = sld [smem:[#allocation3]] }
  0x16   :  { %v44_v56 = vxor.u32 %v4407_v53, %v40_v54  ;;  %vm45_vm3 = vcmp.lt.s32.totalorder %v43_v55, 8  ;;  %vm48_vm6 = vcmp.le.s32.totalorder %v4407_v53, %v40_v54 }
  0x17   :  { %vm49_vm7 = vmand %vm45_vm3, %vm47_vm4 }
  0x18   :  { %3849 = vmatpush3.bf16.msra.mxu1 %v3846_v19  ;;  %vm46_vm5 = vcmp.lt.s32.totalorder %v44_v56, 8  ;;  %v4416_v58 = vsel %vm49_vm7, 0.0, %v4258_v57 }
  0x19   :  { %vm50_vm8 = vmand %vm46_vm5, %vm48_vm6 }
  0x1a   :  { %v4418_v60 = vsel %vm50_vm8, 0.0, %v4258_v57 }
  0x9e   :  { %v85_v4 = vpop.xlane.xlu0 %84 }
  0x9f   :  { %v90_v5 = vmul.f32 0.03125, %v85_v4 }
  0xa1   :  { %v92_v6 = vsub.f32 %v4325_v0, %v90_v5 }
  0xa2   :  { %v88_v7 = vpop.xlane.xlu0 %87 }
  0xa3   :  { %v91_v8 = vmul.f32 0.03125, %v88_v7  ;;  %v94_v9 = vmul.f32 %v92_v6, %v92_v6 }
  0xa5   :  { %v93_v10 = vsub.f32 %v4330_v1, %v91_v8  ;;  %v96_v11 = vsel %vm82_vm0, %v94_v9, 0.0 }
  0xa6   :  { %97 = vadd.xlane.f32.xlu1 %v96_v11 }
  0xa7   :  { %v95_v12 = vmul.f32 %v93_v10, %v93_v10 }
  0xa9   :  { %v99_v13 = vsel %vm82_vm0, %v95_v12, 0.0 }
  0xaa   :  { %100 = vadd.xlane.f32.xlu1 %v99_v13 }
 0x133   :  { %v98_v20 = vpop.xlane.xlu1 %97 }
 0x134   :  { %v102_v21 = vmul.f32 0.03125, %v98_v20 }
 0x136   :  { %v104_v23 = vadd.f32 1e-05, %v102_v21 }
 0x137   :  { %v101_v24 = vpop.xlane.xlu1 %100 }
 0x138   :  { %4139 = vrsqrt.f32 %v104_v23  ;;  %v103_v25 = vmul.f32 0.03125, %v101_v24 }
 0x13a   :  { %v105_v27 = vadd.f32 1e-05, %v103_v25 }
 0x13c   :  { %4141 = vrsqrt.f32 %v105_v27 }
 0x142   :  { %v4140_v32 = vpop.eup %4139 }
 0x143   :  { %v108_v33 = vmul.f32 %v4140_v32, %v92_v6 }
 0x145   :  { %v114_v35 = vmul.f32 %v113_v31, %v108_v33 }
 0x146   :  { %v4142_v36 = vpop.eup %4141 }
 0x147   :  { %v109_v37 = vmul.f32 %v4142_v36, %v93_v10  ;;  %v120_v38 = vadd.f32 %v119_v34, %v114_v35 }
 0x149   :  { %v115_v39 = vmul.f32 %v113_v31, %v109_v37  ;;  %3566 = vmatprep.mubr.msk.f32.mxu1 %vm82_vm0, %v120_v38 }
 0x14b   :  { %v121_v40 = vadd.f32 %v119_v34, %v115_v39 }
 0x14d   :  { %3567 = vmatmul.mubr.msk.f32.vlgmr.msra.gmra.mrb[0].mxu1 %vm82_vm0, %v121_v40  ;;  %v58_v40 = vld [vmem:[%s4897_s4] sm:$0xff] }
 0x220   :  { %v3568_v43 = vpop.f32.mrb[0].mxu1 }
 0x221   :  { %v4375_v44 = vadd.f32 %v3568_v43, %v125_v42  ;;  %v198_v45 = vpop.f32.mrb[1].mxu1 }
 0x222   :  { %v4377_v46 = vadd.f32 %v198_v45, %v125_v42 }
 0x224   :  { %3573 = vmatprep.mubr.msk.f32.mxu1 %vm219_vm1, %v4377_v46  ;;  %v4383_v47 = vpack.i.bf16 %v4375_v44, %v4377_v46 }
 0x226   :  { %4060 = vrot.lane.b32.xlu0 %v4383_v47, %s4254_s26 }
 0x22a   :  { %4070 = vrot.lane.b32.xlu0 %v4383_v47, %s4255_s27 }
 0x22e   :  { %496 = vrot.lane.b32.xlu0 %v4377_v46, %s4256_s28 }
 0x232   :  { %498 = vrot.lane.b32.xlu0 %v4375_v44, %s4256_s28 }
 0x236   :  { %779 = vrot.lane.b32.xlu0 %v4377_v46, %s4257_s29 }
 0x298   :  { %v4061_v48 = vpop.permute.xlu0 %4060 }
 0x299   :  { %v4063_v49 = vunpack.i.h.bf16 %v4061_v48  ;;  %v4062_v50 = vunpack.i.l.bf16 %v4061_v48 }
 0x29b   :  { %v3850_v52 = vpack.c.bf16 %v4063_v49, %v4062_v50 }
 0x29c   :  { %v4071_v16 = vpop.permute.xlu0 %4070 }
 0x29d   :  { %3852 = vmatprep.subr.msk.bf16.mxu1 %vm4397_vm2, %v3850_v52  ;;  %v4073_v18 = vunpack.i.h.bf16 %v4071_v16  ;;  %v4072_v19 = vunpack.i.l.bf16 %v4071_v16 }
 0x29e   :  { %3855 = vmatpush3.bf16.xpose.msk.msra.mxu1 %vm4397_vm2, %v3850_v52 }
 0x29f   :  { %v3860_v23 = vpack.c.bf16 %v4073_v18, %v4072_v19  ;;  %3583 = vmatprep.subr.mxu1 %v58_v40 }
 0x2a0   :  { %v497_v33 = vpop.permute.xlu0 %496 }
 0x2a4   :  { %v499_v37 = vpop.permute.xlu0 %498 }
 0x2a5   :  { %3574 = vmatmul.mubr.msk.f32.vlgmr.msra.gmra.mrb[2].mxu1 %vm219_vm1, %v4375_v44 }
 0x2a6   :  { %3584 = vmatpush3.msra.mxu1 %v58_v40 }
 0x2a8   :  { %v780_v38 = vpop.permute.xlu0 %779 }
 0x378   :  { %v3575_v59 = vpop.f32.mrb[2].mxu1 }
 0x379   :  { %v294_v61 = vpop.f32.mrb[3].mxu1  ;;  %v300_v63 = vadd.f32 %v3575_v59, %v4418_v60 }
 0x37a   :  { %v295_v62 = vadd.f32 %v294_v61, %v4416_v58 }
 0x37b   :  { %v307_v3 = vsel %vm303_vm9, %v300_v63, -inf }
 0x37c   :  { %v304_v2 = vsel %vm303_vm9, %v295_v62, -inf }
 0x37d   :  { %305 = vmax.xlane.f32.xlu1 %v304_v2 }
 0x381   :  { %308 = vmax.xlane.f32.xlu1 %v307_v3 }
 0x40a   :  { %v306_v4 = vpop.xlane.xlu1 %305 }
 0x40b   :  { %v310_v5 = vsub.f32 %v295_v62, %v306_v4 }
 0x40d   :  { %v312_v8 = vmul.f32 1.442695, %v310_v5 }
 0x40e   :  { %v309_v6 = vpop.xlane.xlu1 %308 }
 0x40f   :  { %v311_v7 = vsub.f32 %v300_v63, %v309_v6 }
 0x411   :  { %v314_v9 = vmul.f32 1.442695, %v311_v7 }
 0x413   :  { %4143 = vpow2.f32 %v314_v9 }
 0x414   :  { %4145 = vpow2.f32 %v312_v8 }
 0x41d   :  { %v4144_v10 = vpop.eup %4143 }
 0x41e   :  { %v319_v11 = vsel %vm303_vm9, %v4144_v10, 0.0  ;;  %v4146_v12 = vpop.eup %4145 }
 0x41f   :  { %320 = vadd.xlane.f32.xlu1 %v319_v11  ;;  %v316_v13 = vsel %vm303_vm9, %v4146_v12, 0.0 }
 0x423   :  { %317 = vadd.xlane.f32.xlu1 %v316_v13 }
 0x434   :  { %4065 = vrot.lane.b32.xlu1 %v4383_v47, %s4259_s30 }
 0x438   :  { %4075 = vrot.lane.b32.xlu1 %v4383_v47, %s4260_s10 }
 0x43c   :  { %781 = vrot.lane.b32.xlu1 %v4375_v44, %s4257_s29 }
 0x4ac   :  { %v321_v14 = vpop.xlane.xlu1 %320 }
 0x4ad   :  { %4147 = vrcp.f32 %v321_v14 }
 0x4b0   :  { %v318_v15 = vpop.xlane.xlu1 %317 }
 0x4b1   :  { %4149 = vrcp.f32 %v318_v15 }
 0x4b4   :  { %v4066_v17 = vpop.permute.xlu1 %4065 }
 0x4b5   :  { %v4068_v20 = vunpack.i.h.bf16 %v4066_v17  ;;  %v4067_v21 = vunpack.i.l.bf16 %v4066_v17 }
 0x4b7   :  { %v3856_v22 = vpack.c.bf16 %v4068_v20, %v4067_v21  ;;  %v4148_v24 = vpop.eup %4147 }
 0x4b8   :  { %v4076_v27 = vpop.permute.xlu1 %4075  ;;  %v325_v32 = vmul.f32 %v4148_v24, %v4144_v10 }
 0x4b9   :  { %3857 = vmatprep.subr.bf16.mxu0 %v3856_v22  ;;  %v4078_v34 = vunpack.i.h.bf16 %v4076_v27  ;;  %v4077_v35 = vunpack.i.l.bf16 %v4076_v27 }
 0x4ba   :  { %3859 = vmatpush3.bf16.msra.mxu0 %v3856_v22 }
 0x4bb   :  { %v4150_v25 = vpop.eup %4149  ;;  %3862 = vmatprep.subr.msk.bf16.mxu0 %vm4397_vm2, %v3860_v23  ;;  %v3870_v36 = vpack.c.bf16 %v4078_v34, %v4077_v35 }
 0x4bc   :  { %v324_v31 = vmul.f32 %v4150_v25, %v4146_v12  ;;  %v782_v39 = vpop.permute.xlu1 %781 }
 0x4be   :  { %3580 = vmatprep.mubr.msk.f32.mxu0 %vm303_vm9, %v324_v31 }
 0x4bf   :  { %3581 = vmatmul.mubr.msk.f32.vlgmr.msra.gmra.mrb[0].mxu0 %vm303_vm9, %v325_v32 }
 0x4c0   :  { %3592 = vmatprep.mubr.msk.f32.mxu0 %vm219_vm1, %v497_v33 }
 0x4c3   :  { %3865 = vmatpush3.bf16.xpose.msk.msra.mxu0 %vm4397_vm2, %v3860_v23 }
 0x4c4   :  { %3872 = vmatprep.subr.msk.bf16.mxu0 %vm4397_vm2, %v3870_v36 }
 0x4ca   :  { %3593 = vmatmul.mubr.msk.f32.vlgmr.msra.gmra.mrb[2].mxu0 %vm219_vm1, %v499_v37 }
 0x4cb   :  { %3875 = vmatpush3.bf16.xpose.msk.msra.mxu0 %vm4397_vm2, %v3870_v36  ;;  %3611 = vmatprep.mubr.msk.f32.mxu0 %vm219_vm1, %v780_v38 }
 0x4d2   :  { %3612 = vmatmul.mubr.msk.f32.vlgmr.msra.gmra.mrb[4].mxu0 %vm219_vm1, %v782_v39 }
 0x592   :  { %v3582_v42 = vpop.f32.mrb[0].mxu0 }
 0x593   :  { %v404_v43 = vpop.f32.mrb[1].mxu0 }
 0x594   :  { %3585 = vmatprep.mubr.msk.f32.mxu1 %vm219_vm1, %v404_v43 }
 0x595   :  { %3586 = vmatmul.mubr.msk.f32.vlgmr.msra.gmra.mrb[4].mxu1 %vm219_vm1, %v3582_v42 }
 0x59d   :  { %v3594_v45 = vpop.f32.mrb[2].mxu0 }
 0x59e   :  { %v584_v48 = vadd.f32 %v3594_v45, %v4418_v60  ;;  %v578_v49 = vpop.f32.mrb[3].mxu0 }
 0x59f   :  { %v579_v50 = vadd.f32 %v578_v49, %v4416_v58  ;;  %v59_v49 = vld [vmem:[%s4897_s4 + $0x8] sm:$0xff] }
 0x5a0   :  { %v590_v52 = vsel %vm303_vm9, %v584_v48, -inf }
 0x5a1   :  { %591 = vmax.xlane.f32.xlu1 %v590_v52  ;;  %v587_v54 = vsel %vm303_vm9, %v579_v50, -inf }
 0x5a2   :  { %588 = vmax.xlane.f32.xlu0 %v587_v54 }
 0x5a5   :  { %v3613_v55 = vpop.f32.mrb[4].mxu0 }
 0x5a6   :  { %v861_v56 = vpop.f32.mrb[5].mxu0  ;;  %v867_v57 = vadd.f32 %v3613_v55, %v4418_v60 }
 0x5a7   :  { %v862_v16 = vadd.f32 %v861_v56, %v4416_v58 }
 0x5a8   :  { %v873_v59 = vsel %vm303_vm9, %v867_v57, -inf }
 0x5a9   :  { %v870_v17 = vsel %vm303_vm9, %v862_v16, -inf }
 0x5b2   :  { %4085 = vrot.lane.b32.xlu1 %v4383_v47, %s4261_s13 }
 0x5b6   :  { %1062 = vrot.lane.b32.xlu1 %v4377_v46, %s4262_s14 }
 0x5ba   :  { %1064 = vrot.lane.b32.xlu1 %v4375_v44, %s4262_s14 }
 0x5de   :  { %874 = vmax.xlane.f32.xlu1 %v873_v59 }
 0x62e   :  { %v592_v61 = vpop.xlane.xlu1 %591 }
 0x62f   :  { %v594_v62 = vsub.f32 %v584_v48, %v592_v61  ;;  %v589_v63 = vpop.xlane.xlu0 %588 }
 0x630   :  { %v593_v2 = vsub.f32 %v579_v50, %v589_v63 }
 0x631   :  { %v597_v3 = vmul.f32 1.442695, %v594_v62 }
 0x632   :  { %v595_v4 = vmul.f32 1.442695, %v593_v2  ;;  %v4086_v5 = vpop.permute.xlu1 %4085 }
 0x633   :  { %4151 = vpow2.f32 %v597_v3  ;;  %v4088_v6 = vunpack.i.h.bf16 %v4086_v5  ;;  %v4087_v7 = vunpack.i.l.bf16 %v4086_v5 }
 0x634   :  { %4153 = vpow2.f32 %v595_v4 }
 0x635   :  { %v3880_v46 = vpack.c.bf16 %v4088_v6, %v4087_v7 }
 0x636   :  { %v1063_v8 = vpop.permute.xlu1 %1062 }
 0x637   :  { %3882 = vmatprep.subr.msk.bf16.mxu0 %vm4397_vm2, %v3880_v46  ;;  %3630 = vmatprep.mubr.msk.f32.mxu0 %vm219_vm1, %v1063_v8 }
 0x638   :  { %3885 = vmatpush3.bf16.xpose.msk.msra.mxu0 %vm4397_vm2, %v3880_v46 }
 0x63a   :  { %v1065_v9 = vpop.permute.xlu1 %1064 }
 0x63d   :  { %v4152_v44 = vpop.eup %4151 }
 0x63e   :  { %v602_v10 = vsel %vm303_vm9, %v4152_v44, 0.0  ;;  %v4154_v11 = vpop.eup %4153 }
 0x63f   :  { %3631 = vmatmul.mubr.msk.f32.vlgmr.msra.gmra.mrb[6].mxu0 %vm219_vm1, %v1065_v9  ;;  %603 = vadd.xlane.f32.xlu0 %v602_v10  ;;  %v599_v12 = vsel %vm303_vm9, %v4154_v11, 0.0 }
 0x643   :  { %600 = vadd.xlane.f32.xlu0 %v599_v12  ;;  %v60_v12 = vld [vmem:[%s4897_s4 + $0x10] sm:$0xff] }
 0x659   :  { %4080 = vrot.lane.b32.xlu0 %v4383_v47, %s4263_s15 }
 0x66b   :  { %v875_v13 = vpop.xlane.xlu1 %874 }
 0x66c   :  { %v877_v14 = vsub.f32 %v867_v57, %v875_v13 }
 0x66e   :  { %v880_v15 = vmul.f32 1.442695, %v877_v14 }
 0x670   :  { %4155 = vpow2.f32 %v880_v15 }
 0x678   :  { %871 = vmax.xlane.f32.xlu0 %v870_v17 }
 0x67a   :  { %v4475_v18 = vpop.eup %4155 }
 0x67b   :  { %v885_v19 = vsel %vm303_vm9, %v4475_v18, 0.0 }
 0x67c   :  { %886 = vadd.xlane.f32.xlu0 %v885_v19 }
 0x6cc   :  { %v604_v20 = vpop.xlane.xlu0 %603 }
 0x6cd   :  { %4157 = vrcp.f32 %v604_v20 }
 0x6d0   :  { %v601_v21 = vpop.xlane.xlu0 %600 }
 0x6d1   :  { %4159 = vrcp.f32 %v601_v21 }
 0x6d4   :  { %v4081_v22 = vpop.permute.xlu0 %4080 }
 0x6d5   :  { %v4083_v23 = vunpack.i.h.bf16 %v4081_v22  ;;  %v4082_v24 = vunpack.i.l.bf16 %v4081_v22 }
 0x6d7   :  { %v3866_v25 = vpack.c.bf16 %v4083_v23, %v4082_v24  ;;  %v4158_v27 = vpop.eup %4157  ;;  %v61_v23 = vld [vmem:[%s4897_s4 + $0x18] sm:$0xff] }
 0x6d8   :  { %v608_v33 = vmul.f32 %v4158_v27, %v4152_v44 }
 0x6d9   :  { %3867 = vmatprep.subr.bf16.mxu1 %v3866_v25 }
 0x6da   :  { %3869 = vmatpush3.bf16.msra.mxu1 %v3866_v25 }
 0x6db   :  { %v4160_v31 = vpop.eup %4159  ;;  %3602 = vmatprep.subr.mxu1 %v59_v49 }
 0x6dc   :  { %v607_v32 = vmul.f32 %v4160_v31, %v4154_v11  ;;  %v209_v31 = vsub.s32 4, %v4352_v26 }
 0x6de   :  { %3599 = vmatprep.mubr.msk.f32.mxu1 %vm303_vm9, %v607_v32  ;;  %v210_v32 = vrot.slane %v4360_v29, %v209_v31 }
 0x6df   :  { %3600 = vmatmul.mubr.msk.f32.vlgmr.msra.gmra.mrb[6].mxu1 %vm303_vm9, %v608_v33 }
 0x6e0   :  { %3603 = vmatpush3.msra.mxu1 %v59_v49  ;;  %v212_v33 = vadd.f32 %v210_v32, %v4330_v1 }
 0x705   :  { %v872_v34 = vpop.xlane.xlu0 %871 }
 0x706   :  { %v876_v35 = vsub.f32 %v862_v16, %v872_v34  ;;  %v211_v34 = vadd.f32 %v210_v32, %v4325_v0 }
 0x708   :  { %v878_v36 = vmul.f32 1.442695, %v876_v35 }
 0x709   :  { %v887_v50 = vpop.xlane.xlu0 %886 }
 0x70a   :  { %4161 = vpow2.f32 %v878_v36 }
 0x712   :  { %v3632_v37 = vpop.f32.mrb[6].mxu0 }
 0x713   :  { %v1144_v38 = vpop.f32.mrb[7].mxu0  ;;  %v1150_v43 = vadd.f32 %v3632_v37, %v4418_v60 }
 0x714   :  { %v4162_v39 = vpop.eup %4161  ;;  %v1145_v40 = vadd.f32 %v1144_v38, %v4416_v58 }
 0x715   :  { %v882_v42 = vsel %vm303_vm9, %v4162_v39, 0.0  ;;  %v1156_v48 = vsel %vm303_vm9, %v1150_v43, -inf }
 0x716   :  { %883 = vadd.xlane.f32.xlu0 %v882_v42  ;;  %v1153_v45 = vsel %vm303_vm9, %v1145_v40, -inf }
 0x717   :  { %1154 = vmax.xlane.f32.xlu1 %v1153_v45 }
 0x71b   :  { %1157 = vmax.xlane.f32.xlu1 %v1156_v48 }
 0x72c   :  { %4090 = vrot.lane.b32.xlu0 %v4383_v47, %s4264_s1 }
 0x7a3   :  { %v884_v52 = vpop.xlane.xlu0 %883 }
 0x7a4   :  { %v1155_v54 = vpop.xlane.xlu1 %1154  ;;  %4163 = vrcp.f32 %v884_v52 }
 0x7a5   :  { %v1159_v55 = vsub.f32 %v1145_v40, %v1155_v54  ;;  %4165 = vrcp.f32 %v887_v50 }
 0x7a7   :  { %v4091_v56 = vpop.permute.xlu0 %4090  ;;  %v1161_v2 = vmul.f32 1.442695, %v1159_v55  ;;  %v62_v55 = vld [vmem:[%s4898_s5] sm:$0xff] }
 0x7a8   :  { %v4093_v57 = vunpack.i.h.bf16 %v4091_v56  ;;  %v4092_v59 = vunpack.i.l.bf16 %v4091_v56  ;;  %v1158_v61 = vpop.xlane.xlu1 %1157  ;;  %v63_v56 = vld [vmem:[%s4898_s5 + $0x8] sm:$0xff] }
 0x7a9   :  { %v1160_v62 = vsub.f32 %v1150_v43, %v1158_v61  ;;  %v65_v61 = vld [vmem:[%s4898_s5 + $0x18] sm:$0xff] }
 0x7aa   :  { %v3876_v63 = vpack.c.bf16 %v4093_v57, %v4092_v59  ;;  %v3890_v57 = vpack.c.bf16 %v63_v56, %v62_v55  ;;  %v64_v59 = vld [vmem:[%s4898_s5 + $0x10] sm:$0xff] }
 0x7ab   :  { %v1163_v3 = vmul.f32 1.442695, %v1160_v62  ;;  %v3894_v62 = vpack.c.bf16 %v65_v61, %v64_v59 }
 0x7ac   :  { %3877 = vmatprep.subr.bf16.mxu1 %v3876_v63  ;;  %3891 = vmatprep.subr.bf16.mxu0 %v3890_v57 }
 0x7ad   :  { %4167 = vpow2.f32 %v1163_v3  ;;  %3893 = vmatpush3.bf16.msra.mxu0 %v3890_v57 }
 0x7ae   :  { %4169 = vpow2.f32 %v1161_v2  ;;  %v4164_v4 = vpop.eup %4163  ;;  %3895 = vmatprep.subr.bf16.mxu0 %v3894_v62 }
 0x7af   :  { %v4166_v7 = vpop.eup %4165  ;;  %v890_v46 = vmul.f32 %v4164_v4, %v4162_v39 }
 0x7b0   :  { %v891_v44 = vmul.f32 %v4166_v7, %v4475_v18  ;;  %v1373_v7 = vsub.s32 2, %v4352_v26 }
 0x7b1   :  { %3897 = vmatpush3.bf16.msra.mxu0 %v3894_v62 }
 0x7b2   :  { %v3601_v5 = vpop.f32.mrb[6].mxu1 }
 0x7b3   :  { %v687_v6 = vpop.f32.mrb[7].mxu1 }
 0x7b4   :  { %3604 = vmatprep.mubr.msk.f32.mxu1 %vm219_vm1, %v687_v6 }
 0x7b5   :  { %3605 = vmatmul.mubr.msk.f32.vlgmr.msra.gmra.mrb[4].mxu1 %vm219_vm1, %v3601_v5 }
 0x7b6   :  { %3879 = vmatpush3.bf16.msra.mxu1 %v3876_v63  ;;  %3618 = vmatprep.mubr.msk.f32.mxu1 %vm303_vm9, %v890_v46  ;;  %v1379_v46 = vsub.s32 3, %v4352_v26 }
 0x7b7   :  { %v4168_v8 = vpop.eup %4167  ;;  %3621 = vmatprep.subr.mxu1 %v60_v12 }
 0x7b8   :  { %v1168_v9 = vsel %vm303_vm9, %v4168_v8, 0.0  ;;  %v4170_v10 = vpop.eup %4169 }
 0x7b9   :  { %1169 = vadd.xlane.f32.xlu1 %v1168_v9  ;;  %3619 = vmatmul.mubr.msk.f32.vlgmr.msra.gmra.mrb[8].mxu1 %vm303_vm9, %v891_v44  ;;  %v1165_v11 = vsel %vm303_vm9, %v4170_v10, 0.0 }
 0x7ba   :  { %3622 = vmatpush3.msra.mxu1 %v60_v12 }
 0x7bd   :  { %1166 = vadd.xlane.f32.xlu1 %v1165_v11 }
 0x7ce   :  { %4095 = vrot.lane.b32.xlu1 %v4383_v47, %s4265_s17 }
 0x846   :  { %v1170_v13 = vpop.xlane.xlu1 %1169 }
 0x84a   :  { %v1167_v14 = vpop.xlane.xlu1 %1166 }
 0x84b   :  { %4171 = vrcp.f32 %v1167_v14 }
 0x84c   :  { %4173 = vrcp.f32 %v1170_v13 }
 0x84e   :  { %v4096_v15 = vpop.permute.xlu1 %4095 }
 0x84f   :  { %v4098_v16 = vunpack.i.h.bf16 %v4096_v15  ;;  %v4097_v17 = vunpack.i.l.bf16 %v4096_v15 }
 0x851   :  { %v3886_v18 = vpack.c.bf16 %v4098_v16, %v4097_v17  ;;  %v66_v17 = vld [vmem:[%s4899_s6] sm:$0xff] }
 0x853   :  { %3887 = vmatprep.subr.bf16.mxu1 %v3886_v18 }
 0x855   :  { %v4172_v19 = vpop.eup %4171 }
 0x856   :  { %v4174_v22 = vpop.eup %4173  ;;  %v1173_v47 = vmul.f32 %v4172_v19, %v4170_v10  ;;  %v1380_v10 = vrot.slane %v4360_v29, %v1379_v46 }
 0x857   :  { %v1174_v24 = vmul.f32 %v4174_v22, %v4168_v8  ;;  %v1374_v8 = vrot.slane %v4360_v29, %v1373_v7 }
 0x88c   :  { %v3620_v20 = vpop.f32.mrb[8].mxu1 }
 0x88d   :  { %v970_v21 = vpop.f32.mrb[9].mxu1 }
 0x88e   :  { %3623 = vmatprep.mubr.msk.f32.mxu1 %vm219_vm1, %v970_v21  ;;  %v69_v21 = vld [vmem:[%s4899_s6 + $0x18] sm:$0xff] }
 0x88f   :  { %3624 = vmatmul.mubr.msk.f32.vlgmr.msra.gmra.mrb[4].mxu1 %vm219_vm1, %v3620_v20  ;;  %v68_v20 = vld [vmem:[%s4899_s6 + $0x10] sm:$0xff] }
 0x890   :  { %3889 = vmatpush3.bf16.msra.mxu1 %v3886_v18  ;;  %3637 = vmatprep.mubr.msk.f32.mxu1 %vm303_vm9, %v1173_v47  ;;  %v67_v18 = vld [vmem:[%s4899_s6 + $0x8] sm:$0xff]  ;;  %v3902_v22 = vpack.c.bf16 %v69_v21, %v68_v20  ;;  %v70_v47 = vld [vmem:[%s4899_s6 + $0x20] sm:$0xff] }
 0x891   :  { %3640 = vmatprep.subr.mxu1 %v61_v23  ;;  %v3898_v19 = vpack.c.bf16 %v67_v18, %v66_v17 }
 0x893   :  { %3638 = vmatmul.mubr.msk.f32.vlgmr.msra.gmra.mrb[10].mxu1 %vm303_vm9, %v1174_v24 }
 0x894   :  { %3641 = vmatpush3.msra.mxu1 %v61_v23  ;;  %v71_v23 = vld [vmem:[%s4899_s6 + $0x28] sm:$0xff] }
 0x895   :  { %3899 = vmatprep.subr.bf16.mxu1 %v3898_v19  ;;  %v3906_v24 = vpack.c.bf16 %v71_v23, %v70_v47 }
 0x966   :  { %v3639_v25 = vpop.f32.mrb[10].mxu1 }
 0x967   :  { %v1253_v27 = vpop.f32.mrb[11].mxu1 }
 0x968   :  { %3642 = vmatprep.mubr.msk.f32.mxu1 %vm219_vm1, %v1253_v27  ;;  %v73_v27 = vld [vmem:[%s4899_s6 + $0x38] sm:$0xff] }
 0x969   :  { %3643 = vmatmul.mubr.msk.f32.vlgmr.msra.gmra.mrb[4].mxu1 %vm219_vm1, %v3639_v25  ;;  %v72_v25 = vld [vmem:[%s4899_s6 + $0x30] sm:$0xff] }
 0x96a   :  { %3901 = vmatpush3.bf16.msra.mxu1 %v3898_v19  ;;  %v3910_v32 = vpack.c.bf16 %v73_v27, %v72_v25  ;;  %v3332_v25 = vld [vmem:[%s4896_s3 + $0x20] sm:$0xff]  ;;  %v3333_v27 = vld [vmem:[%s4896_s3 + $0x28] sm:$0xff] }
 0x96b   :  { %3903 = vmatprep.subr.bf16.mxu1 %v3902_v22 }
 0x96e   :  { %3905 = vmatpush3.bf16.msra.mxu1 %v3902_v22 }
 0x96f   :  { %3907 = vmatprep.subr.bf16.mxu1 %v3906_v24 }
 0x972   :  { %3909 = vmatpush3.bf16.msra.mxu1 %v3906_v24 }
 0x973   :  { %3911 = vmatprep.subr.bf16.mxu1 %v3910_v32 }
 0x976   :  { %3913 = vmatpush3.bf16.msra.mxu1 %v3910_v32  ;;  %v3930_v32 = vpack.c.bf16 %v3333_v27, %v3332_v25 }
 0x978   :  { %3931 = vmatprep.subr.bf16.mxu0 %v3930_v32 }
 0xa3c   :  { %v3644_v35 = vpop.f32.mrb[4].mxu1 }
 0xa3d   :  { %v4518_v36 = vadd.f32 %v3644_v35, %v212_v33  ;;  %v1334_v37 = vpop.f32.mrb[5].mxu1  ;;  %v74_v33 = vld [vmem:[%s4899_s6 + $0x40] sm:$0xff] }
 0xa3e   :  { %v4520_v38 = vadd.f32 %v1334_v37, %v211_v34  ;;  %v75_v34 = vld [vmem:[%s4899_s6 + $0x48] sm:$0xff]  ;;  %v76_v37 = vld [vmem:[%s4899_s6 + $0x50] sm:$0xff] }
 0xa3f   :  { %v1348_v39 = vsel %vm82_vm0, %v4518_v36, 0.0  ;;  %v3914_v35 = vpack.c.bf16 %v75_v34, %v74_v33  ;;  %v3334_v33 = vld [vmem:[%s4896_s3 + $0x30] sm:$0xff]  ;;  %v3335_v34 = vld [vmem:[%s4896_s3 + $0x38] sm:$0xff] }
 0xa40   :  { %1349 = vadd.xlane.f32.xlu1 %v1348_v39  ;;  %v1345_v40 = vsel %vm82_vm0, %v4520_v38, 0.0  ;;  %v77_v39 = vld [vmem:[%s4899_s6 + $0x58] sm:$0xff] }
 0xa41   :  { %1346 = vadd.xlane.f32.xlu0 %v1345_v40  ;;  %3915 = vmatprep.subr.bf16.mxu1 %v3914_v35  ;;  %v3918_v40 = vpack.c.bf16 %v77_v39, %v76_v37 }
 0xa42   :  { %3917 = vmatpush3.bf16.msra.mxu1 %v3914_v35  ;;  %v3934_v35 = vpack.c.bf16 %v3335_v34, %v3334_v33 }
 0xa43   :  { %3919 = vmatprep.subr.bf16.mxu1 %v3918_v40 }
 0xa46   :  { %3921 = vmatpush3.bf16.msra.mxu1 %v3918_v40 }
 0xacd   :  { %v1350_v42 = vpop.xlane.xlu1 %1349 }
 0xace   :  { %v1352_v43 = vmul.f32 0.03125, %v1350_v42  ;;  %v1347_v45 = vpop.xlane.xlu0 %1346  ;;  %v78_v42 = vld [vmem:[%s4899_s6 + $0x60] sm:$0xff] }
 0xacf   :  { %v1351_v1 = vmul.f32 0.03125, %v1347_v45 }
 0xad0   :  { %v1354_v0 = vsub.f32 %v4518_v36, %v1352_v43  ;;  %v79_v43 = vld [vmem:[%s4899_s6 + $0x68] sm:$0xff] }
 0xad1   :  { %v1353_v48 = vsub.f32 %v4520_v38, %v1351_v1  ;;  %v3922_v45 = vpack.c.bf16 %v79_v43, %v78_v42  ;;  %v80_v1 = vld [vmem:[%s4899_s6 + $0x70] sm:$0xff] }
 0xad2   :  { %v1356_v52 = vmul.f32 %v1354_v0, %v1354_v0 }
 0xad3   :  { %v1355_v49 = vmul.f32 %v1353_v48, %v1353_v48  ;;  %3923 = vmatprep.subr.bf16.mxu1 %v3922_v45 }
 0xad4   :  { %v1360_v54 = vsel %vm82_vm0, %v1356_v52, 0.0  ;;  %3925 = vmatpush3.bf16.msra.mxu1 %v3922_v45 }
 0xad5   :  { %v1357_v50 = vsel %vm82_vm0, %v1355_v49, 0.0  ;;  %v1385_v49 = vsub.s32 7, %v4352_v26 }
 0xad6   :  { %1358 = vadd.xlane.f32.xlu0 %v1357_v50 }
 0xad7   :  { %v1386_v50 = vrot.slane %v4360_v29, %v1385_v49 }
 0xada   :  { %1361 = vadd.xlane.f32.xlu0 %v1360_v54 }
 0xb63   :  { %v1359_v63 = vpop.xlane.xlu0 %1358 }
 0xb64   :  { %v1363_v2 = vmul.f32 0.03125, %v1359_v63 }
 0xb66   :  { %v1365_v3 = vadd.f32 1e-05, %v1363_v2 }
 0xb67   :  { %v1362_v4 = vpop.xlane.xlu0 %1361 }
 0xb68   :  { %4175 = vrsqrt.f32 %v1365_v3  ;;  %v1364_v5 = vmul.f32 0.03125, %v1362_v4 }
 0xb6a   :  { %v1366_v6 = vadd.f32 1e-05, %v1364_v5 }
 0xb6c   :  { %4177 = vrsqrt.f32 %v1366_v6 }
 0xb72   :  { %v4176_v44 = vpop.eup %4175 }
 0xb73   :  { %v1369_v9 = vmul.f32 %v4176_v44, %v1353_v48 }
 0xb75   :  { %v1375_v11 = vmul.f32 %v1374_v8, %v1369_v9  ;;  %v1563_v9 = vsub.s32 5, %v4352_v26 }
 0xb76   :  { %v4178_v12 = vpop.eup %4177 }
 0xb77   :  { %v1370_v13 = vmul.f32 %v4178_v12, %v1354_v0  ;;  %v1381_v14 = vadd.f32 %v1380_v10, %v1375_v11  ;;  %v81_v0 = vld [vmem:[%s4899_s6 + $0x78] sm:$0xff]  ;;  %v1564_v11 = vrot.slane %v4360_v29, %v1563_v9 }
 0xb78   :  { %v3926_v48 = vpack.c.bf16 %v81_v0, %v80_v1  ;;  %v4637_v1 = vld [vmem:[%s4895_s2 + $0x8] sm:$0xff] }
 0xb79   :  { %v1376_v15 = vmul.f32 %v1374_v8, %v1370_v13  ;;  %3653 = vmatprep.mubr.msk.f32.mxu0 %vm82_vm0, %v1381_v14  ;;  %v1630_v0 = vrot.slane %v4637_v1, %v4355_v28 }
 0xb7a   :  { %3927 = vmatprep.subr.bf16.mxu1 %v3926_v48 }
 0xb7b   :  { %v1382_v16 = vadd.f32 %v1380_v10, %v1376_v15  ;;  %3929 = vmatpush3.bf16.msra.mxu1 %v3926_v48 }
 0xb7d   :  { %3654 = vmatmul.mubr.msk.f32.vlgmr.msra.gmra.mrb[8].mxu0 %vm82_vm0, %v1382_v16 }
 0xb7e   :  { %3933 = vmatpush3.bf16.msra.mxu0 %v3930_v32 }
 0xb7f   :  { %3935 = vmatprep.subr.bf16.mxu0 %v3934_v35 }
 0xb82   :  { %3937 = vmatpush3.bf16.msra.mxu0 %v3934_v35 }
 0xc50   :  { %v3655_v52 = vpop.f32.mrb[8].mxu0 }
 0xc51   :  { %v1465_v54 = vadd.f32 %v3655_v52, %v1386_v50  ;;  %v1459_v55 = vpop.f32.mrb[9].mxu0  ;;  %v1636_v52 = vrot.slane %v4637_v1, %v4363_v30 }
 0xc52   :  { %v1460_v56 = vadd.f32 %v1459_v55, %v1386_v50 }
 0xc53   :  { %v3330_v57 = vmul.f32 -1.702, %v1465_v54 }
 0xc54   :  { %v3329_v59 = vmul.f32 -1.702, %v1460_v56 }
 0xc55   :  { %v1474_v61 = vmul.f32 1.442695, %v3330_v57 }
 0xc56   :  { %v1472_v62 = vmul.f32 1.442695, %v3329_v59 }
 0xc57   :  { %4179 = vpow2.f32 %v1474_v61 }
 0xc58   :  { %4181 = vpow2.f32 %v1472_v62  ;;  %v1642_v62 = vrot.slane %v4637_v1, %v124_v41 }
 0xc61   :  { %v4180_v63 = vpop.eup %4179 }
 0xc62   :  { %v4182_v2 = vpop.eup %4181  ;;  %v1477_v3 = vadd.f32 1.0, %v4180_v63 }
 0xc63   :  { %v1476_v4 = vadd.f32 1.0, %v4182_v2 }
 0xc64   :  { %4183 = vrcp.f32 %v1477_v3 }
 0xc65   :  { %4185 = vrcp.f32 %v1476_v4 }
 0xc6e   :  { %v4184_v5 = vpop.eup %4183 }
 0xc6f   :  { %v4186_v6 = vpop.eup %4185  ;;  %v1483_v44 = vmul.f32 %v4184_v5, %v1465_v54 }
 0xc70   :  { %v1482_v8 = vmul.f32 %v4186_v6, %v1460_v56 }
 0xc72   :  { %3688 = vmatprep.mubr.f32.mxu1 %v1482_v8 }
 0xc73   :  { %3689 = vmatmul.mubr.f32.vlgmr.msra.gmra.mrb[12].mxu1 %v1483_v44 }
 0xd46   :  { %v3690_v10 = vpop.f32.mrb[12].mxu1 }
 0xd47   :  { %v1550_v12 = vpop.f32.mrb[13].mxu1  ;;  %v1560_v13 = vadd.f32 %v4518_v36, %v3690_v10 }
 0xd48   :  { %v1559_v14 = vadd.f32 %v4520_v38, %v1550_v12 }
 0xd49   :  { %v4612_v16 = vadd.f32 %v1564_v11, %v1560_v13 }
 0xd4a   :  { %v4610_v15 = vadd.f32 %v1564_v11, %v1559_v14 }
 0xd4b   :  { %v1604_v18 = vsel %vm82_vm0, %v4612_v16, 0.0 }
 0xd4c   :  { %v1601_v17 = vsel %vm82_vm0, %v4610_v15, 0.0 }
 0xd4d   :  { %1602 = vadd.xlane.f32.xlu0 %v1601_v17 }
 0xd51   :  { %1605 = vadd.xlane.f32.xlu0 %v1604_v18 }
 0xdda   :  { %v1603_v19 = vpop.xlane.xlu0 %1602 }
 0xddb   :  { %v1607_v20 = vmul.f32 0.03125, %v1603_v19 }
 0xddd   :  { %v1609_v29 = vsub.f32 %v4610_v15, %v1607_v20 }
 0xdde   :  { %v1606_v21 = vpop.xlane.xlu0 %1605 }
 0xddf   :  { %v1608_v36 = vmul.f32 0.03125, %v1606_v21  ;;  %v1611_v22 = vmul.f32 %v1609_v29, %v1609_v29 }
 0xde1   :  { %v1610_v38 = vsub.f32 %v4612_v16, %v1608_v36  ;;  %v1613_v47 = vsel %vm82_vm0, %v1611_v22, 0.0 }
 0xde2   :  { %1614 = vadd.xlane.f32.xlu0 %v1613_v47 }
 0xde3   :  { %v1612_v23 = vmul.f32 %v1610_v38, %v1610_v38 }
 0xde5   :  { %v1616_v24 = vsel %vm82_vm0, %v1612_v23, 0.0 }
 0xde6   :  { %1617 = vadd.xlane.f32.xlu1 %v1616_v24 }
 0xe6f   :  { %v1615_v37 = vpop.xlane.xlu0 %1614 }
 0xe70   :  { %v1619_v39 = vmul.f32 0.03125, %v1615_v37  ;;  %v3336_v37 = vld [vmem:[%s4897_s4 + $0x20] sm:$0xff] }
 0xe72   :  { %v1621_v40 = vadd.f32 1e-05, %v1619_v39 }
 0xe73   :  { %v1618_v42 = vpop.xlane.xlu1 %1617 }
 0xe74   :  { %4187 = vrsqrt.f32 %v1621_v40  ;;  %v1620_v43 = vmul.f32 0.03125, %v1618_v42 }
 0xe76   :  { %v1622_v45 = vadd.f32 1e-05, %v1620_v43 }
 0xe78   :  { %4189 = vrsqrt.f32 %v1622_v45 }
 0xe7e   :  { %v4188_v48 = vpop.eup %4187 }
 0xe7f   :  { %v1625_v50 = vmul.f32 %v4188_v48, %v1609_v29 }
 0xe81   :  { %v1631_v54 = vmul.f32 %v1630_v0, %v1625_v50 }
 0xe82   :  { %v4190_v55 = vpop.eup %4189 }
 0xe83   :  { %v1626_v56 = vmul.f32 %v4190_v55, %v1610_v38  ;;  %v1637_v57 = vadd.f32 %v1636_v52, %v1631_v54 }
 0xe85   :  { %v1632_v59 = vmul.f32 %v1630_v0, %v1626_v56  ;;  %3699 = vmatprep.mubr.msk.f32.mxu0 %vm82_vm0, %v1637_v57 }
 0xe87   :  { %v1638_v61 = vadd.f32 %v1636_v52, %v1632_v59 }
 0xe89   :  { %3700 = vmatmul.mubr.msk.f32.vlgmr.msra.gmra.mrb[10].mxu0 %vm82_vm0, %v1638_v61 }
 0xf5c   :  { %v3701_v63 = vpop.f32.mrb[10].mxu0 }
 0xf5d   :  { %v4648_v2 = vadd.f32 %v3701_v63, %v1642_v62  ;;  %v1715_v3 = vpop.f32.mrb[11].mxu0 }
 0xf5e   :  { %v4650_v4 = vadd.f32 %v1715_v3, %v1642_v62 }
 0xf60   :  { %3706 = vmatprep.mubr.msk.f32.mxu0 %vm219_vm1, %v4650_v4  ;;  %v4656_v5 = vpack.i.bf16 %v4648_v2, %v4650_v4 }
 0xf62   :  { %4100 = vrot.lane.b32.xlu0 %v4656_v5, %s4254_s26 }
 0xf66   :  { %4110 = vrot.lane.b32.xlu0 %v4656_v5, %s4255_s27 }
 0xf6a   :  { %2011 = vrot.lane.b32.xlu0 %v4650_v4, %s4256_s28 }
 0xf6e   :  { %2013 = vrot.lane.b32.xlu0 %v4648_v2, %s4256_s28 }
 0xfd4   :  { %v4101_v41 = vpop.permute.xlu0 %4100 }
 0xfd5   :  { %v4103_v6 = vunpack.i.h.bf16 %v4101_v41  ;;  %v4102_v8 = vunpack.i.l.bf16 %v4101_v41 }
 0xfd7   :  { %v3938_v44 = vpack.c.bf16 %v4103_v6, %v4102_v8 }
 0xfd8   :  { %v4111_v35 = vpop.permute.xlu0 %4110 }
 0xfd9   :  { %3940 = vmatprep.subr.msk.bf16.mxu0 %vm4397_vm2, %v3938_v44  ;;  %v4113_v42 = vunpack.i.h.bf16 %v4111_v35  ;;  %v4112_v43 = vunpack.i.l.bf16 %v4111_v35 }
 0xfda   :  { %3943 = vmatpush3.bf16.xpose.msk.msra.mxu0 %vm4397_vm2, %v3938_v44 }
 0xfdb   :  { %v3948_v48 = vpack.c.bf16 %v4113_v42, %v4112_v43 }
 0xfdc   :  { %v2012_v54 = vpop.permute.xlu0 %2011 }
 0xfe0   :  { %v2014_v55 = vpop.permute.xlu0 %2013 }
 0xfe1   :  { %3707 = vmatmul.mubr.msk.f32.vlgmr.msra.gmra.mrb[12].mxu0 %vm219_vm1, %v4648_v2 }
0x10b4   :  { %v3708_v10 = vpop.f32.mrb[12].mxu0 }
0x10b5   :  { %v1810_v11 = vpop.f32.mrb[13].mxu0  ;;  %v1816_v13 = vadd.f32 %v3708_v10, %v4418_v60 }
0x10b6   :  { %v1811_v12 = vadd.f32 %v1810_v11, %v4416_v58 }
0x10b7   :  { %v1822_v17 = vsel %vm303_vm9, %v1816_v13, -inf }
0x10b8   :  { %v1819_v14 = vsel %vm303_vm9, %v1811_v12, -inf }
0x10b9   :  { %1820 = vmax.xlane.f32.xlu1 %v1819_v14 }
0x10bd   :  { %1823 = vmax.xlane.f32.xlu1 %v1822_v17 }
0x1146   :  { %v1821_v18 = vpop.xlane.xlu1 %1820 }
0x1147   :  { %v1825_v19 = vsub.f32 %v1811_v12, %v1821_v18 }
0x1149   :  { %v1827_v21 = vmul.f32 1.442695, %v1825_v19 }
0x114a   :  { %v1824_v20 = vpop.xlane.xlu1 %1823 }
0x114b   :  { %v1826_v29 = vsub.f32 %v1816_v13, %v1824_v20 }
0x114d   :  { %v1829_v36 = vmul.f32 1.442695, %v1826_v29 }
0x114f   :  { %4191 = vpow2.f32 %v1829_v36 }
0x1150   :  { %4193 = vpow2.f32 %v1827_v21 }
0x1159   :  { %v4192_v22 = vpop.eup %4191 }
0x115a   :  { %v1834_v38 = vsel %vm303_vm9, %v4192_v22, 0.0  ;;  %v4194_v47 = vpop.eup %4193 }
0x115b   :  { %1835 = vadd.xlane.f32.xlu1 %v1834_v38  ;;  %v1831_v23 = vsel %vm303_vm9, %v4194_v47, 0.0 }
0x115f   :  { %1832 = vadd.xlane.f32.xlu1 %v1831_v23 }
0x1170   :  { %4105 = vrot.lane.b32.xlu1 %v4656_v5, %s4259_s30 }
0x11e8   :  { %v1836_v24 = vpop.xlane.xlu1 %1835 }
0x11e9   :  { %4195 = vrcp.f32 %v1836_v24 }
0x11ec   :  { %v1833_v25 = vpop.xlane.xlu1 %1832 }
0x11ed   :  { %4197 = vrcp.f32 %v1833_v25 }
0x11f0   :  { %v4106_v27 = vpop.permute.xlu1 %4105 }
0x11f1   :  { %v4108_v32 = vunpack.i.h.bf16 %v4106_v27  ;;  %v4107_v33 = vunpack.i.l.bf16 %v4106_v27 }
0x11f3   :  { %v3944_v34 = vpack.c.bf16 %v4108_v32, %v4107_v33  ;;  %v4196_v39 = vpop.eup %4195 }
0x11f4   :  { %v1840_v0 = vmul.f32 %v4196_v39, %v4192_v22 }
0x11f5   :  { %3945 = vmatprep.subr.bf16.mxu0 %v3944_v34 }
0x11f6   :  { %3947 = vmatpush3.bf16.msra.mxu0 %v3944_v34 }
0x11f7   :  { %v4198_v40 = vpop.eup %4197  ;;  %3716 = vmatprep.subr.mxu0 %v3336_v37 }
0x11f8   :  { %v1839_v45 = vmul.f32 %v4198_v40, %v4194_v47  ;;  %v3337_v40 = vld [vmem:[%s4897_s4 + $0x28] sm:$0xff] }
0x11fa   :  { %3713 = vmatprep.mubr.msk.f32.mxu0 %vm303_vm9, %v1839_v45 }
0x11fb   :  { %3714 = vmatmul.mubr.msk.f32.vlgmr.msra.gmra.mrb[14].mxu0 %vm303_vm9, %v1840_v0 }
0x11fc   :  { %3717 = vmatpush3.msra.mxu0 %v3336_v37 }
0x11fd   :  { %3950 = vmatprep.subr.msk.bf16.mxu0 %vm4397_vm2, %v3948_v48 }
0x12ce   :  { %v3715_v50 = vpop.f32.mrb[14].mxu0 }
0x12cf   :  { %v1919_v52 = vpop.f32.mrb[15].mxu0 }
0x12d0   :  { %3718 = vmatprep.mubr.msk.f32.mxu0 %vm219_vm1, %v1919_v52 }
0x12d1   :  { %3719 = vmatmul.mubr.msk.f32.vlgmr.msra.gmra.mrb[16].mxu0 %vm219_vm1, %v3715_v50 }
0x12d2   :  { %3953 = vmatpush3.bf16.xpose.msk.msra.mxu0 %vm4397_vm2, %v3948_v48  ;;  %3725 = vmatprep.mubr.msk.f32.mxu0 %vm219_vm1, %v2012_v54 }
0x12d3   :  { %3735 = vmatprep.subr.mxu0 %v3337_v40 }
0x12d9   :  { %3726 = vmatmul.mubr.msk.f32.vlgmr.msra.gmra.mrb[18].mxu0 %vm219_vm1, %v2014_v55 }
0x12da   :  { %3736 = vmatpush3.msra.mxu0 %v3337_v40 }
0x13ac   :  { %v3727_v56 = vpop.f32.mrb[18].mxu0 }
0x13ad   :  { %v2099_v57 = vadd.f32 %v3727_v56, %v4418_v60  ;;  %v2093_v59 = vpop.f32.mrb[19].mxu0 }
0x13ae   :  { %v2094_v61 = vadd.f32 %v2093_v59, %v4416_v58 }
0x13af   :  { %v2105_v62 = vsel %vm303_vm9, %v2099_v57, -inf }
0x13b0   :  { %2106 = vmax.xlane.f32.xlu0 %v2105_v62  ;;  %v2102_v63 = vsel %vm303_vm9, %v2094_v61, -inf }
0x13b1   :  { %2103 = vmax.xlane.f32.xlu1 %v2102_v63 }
0x13c2   :  { %4115 = vrot.lane.b32.xlu1 %v4656_v5, %s4263_s15 }
0x13c6   :  { %2294 = vrot.lane.b32.xlu1 %v4650_v4, %s4257_s29 }
0x13ca   :  { %2296 = vrot.lane.b32.xlu1 %v4648_v2, %s4257_s29 }
0x13ce   :  { %4125 = vrot.lane.b32.xlu1 %v4656_v5, %s4261_s13 }
0x13d2   :  { %2579 = vrot.lane.b32.xlu1 %v4648_v2, %s4262_s14 }
0x143d   :  { %v2107_v3 = vpop.xlane.xlu0 %2106 }
0x143e   :  { %v2109_v41 = vsub.f32 %v2099_v57, %v2107_v3  ;;  %v2104_v6 = vpop.xlane.xlu1 %2103 }
0x143f   :  { %v2108_v8 = vsub.f32 %v2094_v61, %v2104_v6 }
0x1440   :  { %v2112_v44 = vmul.f32 1.442695, %v2109_v41 }
0x1441   :  { %v2110_v10 = vmul.f32 1.442695, %v2108_v8 }
0x1442   :  { %4199 = vpow2.f32 %v2112_v44  ;;  %v4116_v11 = vpop.permute.xlu1 %4115 }
0x1443   :  { %v4118_v12 = vunpack.i.h.bf16 %v4116_v11  ;;  %v4117_v13 = vunpack.i.l.bf16 %v4116_v11  ;;  %4201 = vpow2.f32 %v2110_v10 }
0x1445   :  { %v3954_v14 = vpack.c.bf16 %v4118_v12, %v4117_v13 }
0x1446   :  { %v2295_v20 = vpop.permute.xlu1 %2294 }
0x1447   :  { %3955 = vmatprep.subr.bf16.mxu1 %v3954_v14 }
0x1448   :  { %3957 = vmatpush3.bf16.msra.mxu1 %v3954_v14 }
0x144a   :  { %v2297_v36 = vpop.permute.xlu1 %2296 }
0x144c   :  { %v4200_v17 = vpop.eup %4199 }
0x144d   :  { %v2117_v18 = vsel %vm303_vm9, %v4200_v17, 0.0  ;;  %v4202_v19 = vpop.eup %4201 }
0x144e   :  { %2118 = vadd.xlane.f32.xlu0 %v2117_v18  ;;  %v2114_v2 = vsel %vm303_vm9, %v4202_v19, 0.0  ;;  %v4126_v24 = vpop.permute.xlu1 %4125 }
0x144f   :  { %v4128_v32 = vunpack.i.h.bf16 %v4126_v24  ;;  %v4127_v33 = vunpack.i.l.bf16 %v4126_v24  ;;  %v3338_v24 = vld [vmem:[%s4897_s4 + $0x30] sm:$0xff] }
0x1451   :  { %v3968_v35 = vpack.c.bf16 %v4128_v32, %v4127_v33 }
0x1452   :  { %2115 = vadd.xlane.f32.xlu0 %v2114_v2  ;;  %v2580_v39 = vpop.permute.xlu1 %2579 }
0x1468   :  { %4120 = vrot.lane.b32.xlu0 %v4656_v5, %s4260_s10 }
0x146c   :  { %2577 = vrot.lane.b32.xlu0 %v4650_v4, %s4262_s14 }
0x14db   :  { %v2119_v29 = vpop.xlane.xlu0 %2118 }
0x14dc   :  { %4203 = vrcp.f32 %v2119_v29 }
0x14df   :  { %v2116_v21 = vpop.xlane.xlu0 %2115 }
0x14e0   :  { %4205 = vrcp.f32 %v2116_v21 }
0x14e3   :  { %v4121_v22 = vpop.permute.xlu0 %4120 }
0x14e4   :  { %v4123_v38 = vunpack.i.h.bf16 %v4121_v22  ;;  %v4122_v47 = vunpack.i.l.bf16 %v4121_v22 }
0x14e6   :  { %v3958_v23 = vpack.c.bf16 %v4123_v38, %v4122_v47  ;;  %v4204_v25 = vpop.eup %4203 }
0x14e7   :  { %v2123_v4 = vmul.f32 %v4204_v25, %v4200_v17  ;;  %v2578_v37 = vpop.permute.xlu0 %2577 }
0x14e8   :  { %3960 = vmatprep.subr.msk.bf16.mxu1 %vm4397_vm2, %v3958_v23 }
0x14ea   :  { %v4206_v27 = vpop.eup %4205 }
0x14eb   :  { %v2122_v34 = vmul.f32 %v4206_v27, %v4202_v19 }
0x14ed   :  { %3732 = vmatprep.mubr.msk.f32.mxu1 %vm303_vm9, %v2122_v34 }
0x14ee   :  { %3733 = vmatmul.mubr.msk.f32.vlgmr.msra.gmra.mrb[14].mxu1 %vm303_vm9, %v2123_v4 }
0x14ef   :  { %3963 = vmatpush3.bf16.xpose.msk.msra.mxu1 %vm4397_vm2, %v3958_v23  ;;  %3744 = vmatprep.mubr.msk.f32.mxu1 %vm219_vm1, %v2295_v20 }
0x14f0   :  { %3970 = vmatprep.subr.msk.bf16.mxu1 %vm4397_vm2, %v3968_v35 }
0x14f6   :  { %3745 = vmatmul.mubr.msk.f32.vlgmr.msra.gmra.mrb[16].mxu1 %vm219_vm1, %v2297_v36 }
0x14f7   :  { %3973 = vmatpush3.bf16.xpose.msk.msra.mxu1 %vm4397_vm2, %v3968_v35  ;;  %3763 = vmatprep.mubr.msk.f32.mxu1 %vm219_vm1, %v2578_v37 }
0x14fe   :  { %3764 = vmatmul.mubr.msk.f32.vlgmr.msra.gmra.mrb[18].mxu1 %vm219_vm1, %v2580_v39 }
0x15c1   :  { %v3734_v42 = vpop.f32.mrb[14].mxu1 }
0x15c2   :  { %v2202_v43 = vpop.f32.mrb[15].mxu1 }
0x15c3   :  { %3737 = vmatprep.mubr.msk.f32.mxu0 %vm219_vm1, %v2202_v43 }
0x15c4   :  { %3738 = vmatmul.mubr.msk.f32.vlgmr.msra.gmra.mrb[16].mxu0 %vm219_vm1, %v3734_v42 }
0x15c9   :  { %v3746_v45 = vpop.f32.mrb[16].mxu1 }
0x15ca   :  { %v2382_v51 = vadd.f32 %v3746_v45, %v4418_v60  ;;  %v2376_v0 = vpop.f32.mrb[17].mxu1 }
0x15cb   :  { %v2377_v48 = vadd.f32 %v2376_v0, %v4416_v58  ;;  %v3339_v0 = vld [vmem:[%s4897_s4 + $0x38] sm:$0xff] }
0x15cc   :  { %v2388_v50 = vsel %vm303_vm9, %v2382_v51, -inf }
0x15cd   :  { %2389 = vmax.xlane.f32.xlu1 %v2388_v50  ;;  %v2385_v52 = vsel %vm303_vm9, %v2377_v48, -inf }
0x15ce   :  { %2386 = vmax.xlane.f32.xlu0 %v2385_v52 }
0x15d1   :  { %v3765_v54 = vpop.f32.mrb[18].mxu1 }
0x15d2   :  { %v2659_v55 = vpop.f32.mrb[19].mxu1  ;;  %v2665_v57 = vadd.f32 %v3765_v54, %v4418_v60  ;;  %v1727_v54 = vrot.slane %v4637_v1, %v209_v31 }
0x15d3   :  { %v2660_v56 = vadd.f32 %v2659_v55, %v4416_v58 }
0x15d4   :  { %v2671_v61 = vsel %vm303_vm9, %v2665_v57, -inf  ;;  %v1729_v55 = vadd.f32 %v1727_v54, %v4612_v16 }
0x15d5   :  { %v2668_v59 = vsel %vm303_vm9, %v2660_v56, -inf }
0x15d6   :  { %2669 = vmax.xlane.f32.xlu1 %v2668_v59 }
0x15da   :  { %2672 = vmax.xlane.f32.xlu1 %v2671_v61 }
0x165a   :  { %v2390_v62 = vpop.xlane.xlu1 %2389 }
0x165b   :  { %v2392_v63 = vsub.f32 %v2382_v51, %v2390_v62  ;;  %v2387_v3 = vpop.xlane.xlu0 %2386 }
0x165c   :  { %v2391_v41 = vsub.f32 %v2377_v48, %v2387_v3 }
0x165d   :  { %v2395_v6 = vmul.f32 1.442695, %v2392_v63 }
0x165e   :  { %v2393_v8 = vmul.f32 1.442695, %v2391_v41 }
0x165f   :  { %4207 = vpow2.f32 %v2395_v6 }
0x1660   :  { %4209 = vpow2.f32 %v2393_v8 }
0x1663   :  { %v2670_v44 = vpop.xlane.xlu1 %2669 }
0x1664   :  { %v2674_v10 = vsub.f32 %v2660_v56, %v2670_v44 }
0x1666   :  { %v2676_v60 = vmul.f32 1.442695, %v2674_v10 }
0x1667   :  { %v2673_v11 = vpop.xlane.xlu1 %2672 }
0x1668   :  { %v2675_v58 = vsub.f32 %v2665_v57, %v2673_v11  ;;  %v1728_v57 = vadd.f32 %v1727_v54, %v4610_v15  ;;  %v3355_v54 = vld [vmem:[%s4899_s6 + $0xd8] sm:$0xff] }
0x1669   :  { %v4208_v12 = vpop.eup %4207 }
0x166a   :  { %v2678_v13 = vmul.f32 1.442695, %v2675_v58  ;;  %v2400_v14 = vsel %vm303_vm9, %v4208_v12, 0.0  ;;  %v4210_v17 = vpop.eup %4209 }
0x166b   :  { %2401 = vadd.xlane.f32.xlu0 %v2400_v14  ;;  %v2397_v18 = vsel %vm303_vm9, %v4210_v17, 0.0  ;;  %v3342_v14 = vld [vmem:[%s4898_s5 + $0x30] sm:$0xff] }
0x166c   :  { %4211 = vpow2.f32 %v2678_v13 }
0x166d   :  { %4213 = vpow2.f32 %v2676_v60  ;;  %v3341_v60 = vld [vmem:[%s4898_s5 + $0x28] sm:$0xff] }
0x166f   :  { %2398 = vadd.xlane.f32.xlu0 %v2397_v18 }
0x1676   :  { %v4212_v19 = vpop.eup %4211 }
0x1677   :  { %v2683_v2 = vsel %vm303_vm9, %v4212_v19, 0.0  ;;  %v4214_v20 = vpop.eup %4213 }
0x1678   :  { %2684 = vadd.xlane.f32.xlu1 %v2683_v2  ;;  %v2680_v29 = vsel %vm303_vm9, %v4214_v20, 0.0 }
0x167c   :  { %2681 = vadd.xlane.f32.xlu1 %v2680_v29 }
0x1685   :  { %4130 = vrot.lane.b32.xlu0 %v4656_v5, %s4264_s1 }
0x168d   :  { %4135 = vrot.lane.b32.xlu1 %v4656_v5, %s4265_s17 }
0x16f8   :  { %v2402_v21 = vpop.xlane.xlu0 %2401 }
0x16f9   :  { %4215 = vrcp.f32 %v2402_v21 }
0x16fc   :  { %v2399_v36 = vpop.xlane.xlu0 %2398 }
0x16fd   :  { %4217 = vrcp.f32 %v2399_v36 }
0x1700   :  { %v4131_v22 = vpop.permute.xlu0 %4130 }
0x1701   :  { %v4133_v38 = vunpack.i.h.bf16 %v4131_v22  ;;  %v4132_v47 = vunpack.i.l.bf16 %v4131_v22  ;;  %v2889_v22 = vrot.slane %v4637_v1, %v1373_v7  ;;  %v3344_v7 = vld [vmem:[%s4899_s6 + $0x80] sm:$0xff] }
0x1703   :  { %v3964_v23 = vpack.c.bf16 %v4133_v38, %v4132_v47  ;;  %v4216_v27 = vpop.eup %4215 }
0x1704   :  { %v2406_v5 = vmul.f32 %v4216_v27, %v4208_v12  ;;  %v3340_v12 = vld [vmem:[%s4898_s5 + $0x20] sm:$0xff] }
0x1705   :  { %v2685_v25 = vpop.xlane.xlu1 %2684  ;;  %3965 = vmatprep.subr.bf16.mxu0 %v3964_v23  ;;  %v3978_v13 = vpack.c.bf16 %v3341_v60, %v3340_v12 }
0x1706   :  { %3967 = vmatpush3.bf16.msra.mxu0 %v3964_v23  ;;  %v2895_v23 = vrot.slane %v4637_v1, %v1379_v46  ;;  %v3346_v46 = vld [vmem:[%s4899_s6 + $0x90] sm:$0xff] }
0x1707   :  { %v4218_v32 = vpop.eup %4217  ;;  %3754 = vmatprep.subr.mxu0 %v3338_v24  ;;  %3979 = vmatprep.subr.bf16.mxu1 %v3978_v13 }
0x1708   :  { %v2405_v33 = vmul.f32 %v4218_v32, %v4210_v17  ;;  %3981 = vmatpush3.bf16.msra.mxu1 %v3978_v13  ;;  %v3343_v17 = vld [vmem:[%s4898_s5 + $0x38] sm:$0xff] }
0x1709   :  { %v2682_v34 = vpop.xlane.xlu1 %2681  ;;  %v3982_v18 = vpack.c.bf16 %v3343_v17, %v3342_v14 }
0x170a   :  { %3751 = vmatprep.mubr.msk.f32.mxu0 %vm303_vm9, %v2405_v33  ;;  %4219 = vrcp.f32 %v2682_v34  ;;  %v3345_v34 = vld [vmem:[%s4899_s6 + $0x88] sm:$0xff] }
0x170b   :  { %3752 = vmatmul.mubr.msk.f32.vlgmr.msra.gmra.mrb[20].mxu0 %vm303_vm9, %v2406_v5  ;;  %4221 = vrcp.f32 %v2685_v25  ;;  %3983 = vmatprep.subr.bf16.mxu1 %v3982_v18 }
0x170c   :  { %3755 = vmatpush3.msra.mxu0 %v3338_v24  ;;  %3985 = vmatpush3.bf16.msra.mxu1 %v3982_v18 }
0x170d   :  { %v4136_v4 = vpop.permute.xlu1 %4135 }
0x170e   :  { %v4138_v35 = vunpack.i.h.bf16 %v4136_v4  ;;  %v4137_v37 = vunpack.i.l.bf16 %v4136_v4  ;;  %v3986_v4 = vpack.c.bf16 %v3345_v34, %v3344_v7  ;;  %v4268_v7 = vmov 0.0  }
0x1710   :  { %v3974_v39 = vpack.c.bf16 %v4138_v35, %v4137_v37  ;;  %v3347_v35 = vld [vmem:[%s4899_s6 + $0x98] sm:$0xff] }
0x1711   :  { %v3990_v37 = vpack.c.bf16 %v3347_v35, %v3346_v46 }
0x1712   :  { %3975 = vmatprep.subr.bf16.mxu0 %v3974_v39 }
0x1714   :  { %v4220_v40 = vpop.eup %4219 }
0x1715   :  { %v4222_v45 = vpop.eup %4221  ;;  %v2688_v51 = vmul.f32 %v4220_v40, %v4214_v20  ;;  %v3349_v40 = vld [vmem:[%s4899_s6 + $0xa8] sm:$0xff] }
0x1716   :  { %v2689_v48 = vmul.f32 %v4222_v45, %v4212_v19  ;;  %v3351_v45 = vld [vmem:[%s4899_s6 + $0xb8] sm:$0xff] }
0x17de   :  { %v3753_v42 = vpop.f32.mrb[20].mxu0 }
0x17df   :  { %v2485_v43 = vpop.f32.mrb[21].mxu0 }
0x17e0   :  { %3756 = vmatprep.mubr.msk.f32.mxu0 %vm219_vm1, %v2485_v43  ;;  %v3350_v43 = vld [vmem:[%s4899_s6 + $0xb0] sm:$0xff] }
0x17e1   :  { %3757 = vmatmul.mubr.msk.f32.vlgmr.msra.gmra.mrb[16].mxu0 %vm219_vm1, %v3753_v42 }
0x17e2   :  { %3977 = vmatpush3.bf16.msra.mxu0 %v3974_v39  ;;  %3770 = vmatprep.mubr.msk.f32.mxu0 %vm303_vm9, %v2688_v51  ;;  %v3348_v39 = vld [vmem:[%s4899_s6 + $0xa0] sm:$0xff]  ;;  %v3998_v51 = vpack.c.bf16 %v3351_v45, %v3350_v43 }
0x17e3   :  { %3773 = vmatprep.subr.mxu0 %v3339_v0  ;;  %v3994_v42 = vpack.c.bf16 %v3349_v40, %v3348_v39  ;;  %v3082_v40 = vld [vmem:[%s4900_s7] sm:$0x3] }
0x17e4   :  { %v3118_v45 = vrot.slane %v3082_v40, %v4363_v30  ;;  %v3206_v30 = vld [vmem:[%s4901_s8] sm:$0xff] }
0x17e5   :  { %3771 = vmatmul.mubr.msk.f32.vlgmr.msra.gmra.mrb[22].mxu0 %vm303_vm9, %v2689_v48  ;;  %v3353_v48 = vld [vmem:[%s4899_s6 + $0xc8] sm:$0xff] }
0x17e6   :  { %3774 = vmatpush3.msra.mxu0 %v3339_v0  ;;  %v3352_v0 = vld [vmem:[%s4899_s6 + $0xc0] sm:$0xff] }
0x17e7   :  { %3987 = vmatprep.subr.bf16.mxu0 %v3986_v4 }
0x18b8   :  { %v3772_v50 = vpop.f32.mrb[22].mxu0 }
0x18b9   :  { %v2768_v52 = vpop.f32.mrb[23].mxu0 }
0x18ba   :  { %3775 = vmatprep.mubr.msk.f32.mxu0 %vm219_vm1, %v2768_v52  ;;  %v3354_v52 = vld [vmem:[%s4899_s6 + $0xd0] sm:$0xff] }
0x18bb   :  { %3776 = vmatmul.mubr.msk.f32.vlgmr.msra.gmra.mrb[16].mxu0 %vm219_vm1, %v3772_v50  ;;  %v4002_v50 = vpack.c.bf16 %v3353_v48, %v3352_v0  ;;  %v3122_v0 = vstv %s3121_s18 }
0x18bc   :  { %3989 = vmatpush3.bf16.msra.mxu0 %v3986_v4 }
0x18bd   :  { %3991 = vmatprep.subr.bf16.mxu0 %v3990_v37 }
0x18c0   :  { %3993 = vmatpush3.bf16.msra.mxu0 %v3990_v37 }
0x18c1   :  { %3995 = vmatprep.subr.bf16.mxu0 %v3994_v42 }
0x18c4   :  { %3997 = vmatpush3.bf16.msra.mxu0 %v3994_v42  ;;  %v3112_v42 = vrot.slane %v3082_v40, %v4355_v28 }
0x18c5   :  { %3999 = vmatprep.subr.bf16.mxu0 %v3998_v51 }
0x18c8   :  { %4001 = vmatpush3.bf16.msra.mxu0 %v3998_v51 }
0x18c9   :  { %4003 = vmatprep.subr.bf16.mxu0 %v4002_v50 }
0x18cc   :  { %4005 = vmatpush3.bf16.msra.mxu0 %v4002_v50 }
0x198e   :  { %v3777_v56 = vpop.f32.mrb[16].mxu0 }
0x198f   :  { %v4767_v59 = vadd.f32 %v3777_v56, %v1729_v55  ;;  %v2849_v61 = vpop.f32.mrb[17].mxu0  ;;  %v4006_v55 = vpack.c.bf16 %v3355_v54, %v3354_v52  ;;  %v3356_v56 = vld [vmem:[%s4899_s6 + $0xe0] sm:$0xff] }
0x1990   :  { %v4769_v62 = vadd.f32 %v2849_v61, %v1728_v57  ;;  %v3357_v57 = vld [vmem:[%s4899_s6 + $0xe8] sm:$0xff] }
0x1991   :  { %v2863_v63 = vsel %vm82_vm0, %v4767_v59, 0.0  ;;  %4007 = vmatprep.subr.bf16.mxu0 %v4006_v55  ;;  %v4010_v61 = vpack.c.bf16 %v3357_v57, %v3356_v56 }
0x1992   :  { %2864 = vadd.xlane.f32.xlu1 %v2863_v63  ;;  %v2860_v3 = vsel %vm82_vm0, %v4769_v62, 0.0  ;;  %4009 = vmatpush3.bf16.msra.mxu0 %v4006_v55  ;;  %v3358_v63 = vld [vmem:[%s4899_s6 + $0xf0] sm:$0xff] }
0x1993   :  { %2861 = vadd.xlane.f32.xlu0 %v2860_v3  ;;  %4011 = vmatprep.subr.bf16.mxu0 %v4010_v61  ;;  %v3359_v3 = vld [vmem:[%s4899_s6 + $0xf8] sm:$0xff]  ;;  %s3398_s6 = sld [smem:[#allocation3 + $0x1]] }
0x1996   :  { %4013 = vmatpush3.bf16.msra.mxu0 %v4010_v61 }
0x1999   :  { %s3124_s21 = sadd.s32 8, %s3398_s6 }
0x199a   :  { %v3125_v48 = vstv %s3124_s21 }
0x199b   :  { %v3127_v54 = vsel %vm3126_vm11, %v3122_v0, %v3125_v48 }
0x1a1f   :  { %v2865_v41 = vpop.xlane.xlu1 %2864 }
0x1a20   :  { %v2867_v31 = vmul.f32 0.03125, %v2865_v41  ;;  %v2862_v6 = vpop.xlane.xlu0 %2861  ;;  %v4014_v41 = vpack.c.bf16 %v3359_v3, %v3358_v63  ;;  %v3129_v63 = vsel %vm3128_vm12, %v3127_v54, 4294967295  ;;  %v3207_v3 = vld [vmem:[%s4901_s8 + $0x8] sm:$0xff] }
0x1a21   :  { %v2866_v16 = vmul.f32 0.03125, %v2862_v6  ;;  %vm3130_vm13 = vcmp.eq.s32.totalorder %v4407_v53, %v3129_v63  ;;  %v3208_v53 = vld [vmem:[%s4901_s8 + $0x10] sm:$0xff] }
0x1a22   :  { %v2869_v8 = vsub.f32 %v4767_v59, %v2867_v31  ;;  %4015 = vmatprep.subr.bf16.mxu0 %v4014_v41  ;;  %v2901_v31 = vrot.slane %v4637_v1, %v1385_v49 }
0x1a23   :  { %v2868_v15 = vsub.f32 %v4769_v62, %v2866_v16  ;;  %4017 = vmatpush3.bf16.msra.mxu0 %v4014_v41 }
0x1a24   :  { %v2871_v11 = vmul.f32 %v2869_v8, %v2869_v8 }
0x1a25   :  { %v2870_v44 = vmul.f32 %v2868_v15, %v2868_v15 }
0x1a26   :  { %v2875_v58 = vsel %vm82_vm0, %v2871_v11, 0.0 }
0x1a27   :  { %v2872_v10 = vsel %vm82_vm0, %v2870_v44, 0.0 }
0x1a28   :  { %2873 = vadd.xlane.f32.xlu0 %v2872_v10 }
0x1a2c   :  { %2876 = vadd.xlane.f32.xlu0 %v2875_v58 }
0x1ab5   :  { %v2874_v19 = vpop.xlane.xlu0 %2873 }
0x1ab6   :  { %v2878_v2 = vmul.f32 0.03125, %v2874_v19 }
0x1ab8   :  { %v2880_v20 = vadd.f32 1e-05, %v2878_v2 }
0x1ab9   :  { %v2877_v29 = vpop.xlane.xlu0 %2876 }
0x1aba   :  { %4223 = vrsqrt.f32 %v2880_v20  ;;  %v2879_v21 = vmul.f32 0.03125, %v2877_v29  ;;  %v3079_v20 = vrot.slane %v4637_v1, %v1563_v9 }
0x1abc   :  { %v2881_v36 = vadd.f32 1e-05, %v2879_v21 }
0x1abe   :  { %4225 = vrsqrt.f32 %v2881_v36 }
0x1ac4   :  { %v4224_v38 = vpop.eup %4223 }
0x1ac5   :  { %v2884_v47 = vmul.f32 %v4224_v38, %v2868_v15 }
0x1ac7   :  { %v2890_v24 = vmul.f32 %v2889_v22, %v2884_v47 }
0x1ac8   :  { %v4226_v25 = vpop.eup %4225 }
0x1ac9   :  { %v2885_v27 = vmul.f32 %v4226_v25, %v2869_v8  ;;  %v2896_v32 = vadd.f32 %v2895_v23, %v2890_v24 }
0x1acb   :  { %v2891_v33 = vmul.f32 %v2889_v22, %v2885_v27  ;;  %3786 = vmatprep.mubr.msk.f32.mxu1 %vm82_vm0, %v2896_v32 }
0x1acd   :  { %v2897_v5 = vadd.f32 %v2895_v23, %v2891_v33 }
0x1acf   :  { %3787 = vmatmul.mubr.msk.f32.vlgmr.msra.gmra.mrb[20].mxu1 %vm82_vm0, %v2897_v5  ;;  %v4266_v5 = vmov 0.0|0.0  }
0x1ad0   :  { %4018 = vmatprep.subr.bf16.mxu1 %v4266_v5  ;;  %3828 = vmatprep.mubr.msk.f32.mxu1 %vm4267_vm10, %v4268_v7 }
0x1ba2   :  { %v3788_v6 = vpop.f32.mrb[20].mxu1 }
0x1ba3   :  { %v2980_v16 = vadd.f32 %v3788_v6, %v2901_v31  ;;  %v2974_v8 = vpop.f32.mrb[21].mxu1  ;;  %v3399_v6 = vsel %vm3130_vm13, 1.0, %v4268_v7 }
0x1ba4   :  { %v2975_v15 = vadd.f32 %v2974_v8, %v2901_v31  ;;  %v3209_v8 = vld [vmem:[%s4901_s8 + $0x18] sm:$0xff] }
0x1ba5   :  { %v3397_v44 = vmul.f32 -1.702, %v2980_v16 }
0x1ba6   :  { %v3396_v10 = vmul.f32 -1.702, %v2975_v15 }
0x1ba7   :  { %v2989_v11 = vmul.f32 1.442695, %v3397_v44 }
0x1ba8   :  { %v2987_v58 = vmul.f32 1.442695, %v3396_v10 }
0x1ba9   :  { %4227 = vpow2.f32 %v2989_v11 }
0x1baa   :  { %4229 = vpow2.f32 %v2987_v58 }
0x1bb3   :  { %v4228_v12 = vpop.eup %4227 }
0x1bb4   :  { %v4230_v60 = vpop.eup %4229  ;;  %v2992_v13 = vadd.f32 1.0, %v4228_v12 }
0x1bb5   :  { %v2991_v14 = vadd.f32 1.0, %v4230_v60 }
0x1bb6   :  { %4231 = vrcp.f32 %v2992_v13 }
0x1bb7   :  { %4233 = vrcp.f32 %v2991_v14 }
0x1bc0   :  { %v4232_v17 = vpop.eup %4231 }
0x1bc1   :  { %v4234_v18 = vpop.eup %4233  ;;  %v2998_v49 = vmul.f32 %v4232_v17, %v2980_v16  ;;  %v4022_v16 = vpack.c.bf16 %v3207_v3, %v3206_v30 }
0x1bc2   :  { %v2997_v19 = vmul.f32 %v4234_v18, %v2975_v15  ;;  %v4025_v15 = vpack.c.bf16 %v3209_v8, %v3208_v53 }
0x1bc4   :  { %3821 = vmatprep.mubr.f32.mxu0 %v2997_v19 }
0x1bc5   :  { %3822 = vmatmul.mubr.f32.vlgmr.msra.gmra.mrb[24].mxu0 %v2998_v49 }
0x1c98   :  { %v3823_v2 = vpop.f32.mrb[24].mxu0 }
0x1c99   :  { %v3065_v29 = vpop.f32.mrb[25].mxu0  ;;  %v3075_v21 = vadd.f32 %v4767_v59, %v3823_v2 }
0x1c9a   :  { %v3074_v36 = vadd.f32 %v4769_v62, %v3065_v29 }
0x1c9b   :  { %v3081_v47 = vadd.f32 %v3079_v20, %v3075_v21 }
0x1c9c   :  { %v3080_v22 = vadd.f32 %v3079_v20, %v3074_v36 }
0x1c9d   :  { %v3086_v23 = vsel %vm82_vm0, %v3081_v47, 0.0 }
0x1c9e   :  { %v3083_v38 = vsel %vm82_vm0, %v3080_v22, 0.0 }
0x1c9f   :  { %3084 = vadd.xlane.f32.xlu0 %v3083_v38 }
0x1ca3   :  { %3087 = vadd.xlane.f32.xlu0 %v3086_v23 }
0x1d2c   :  { %v3085_v24 = vpop.xlane.xlu0 %3084 }
0x1d2d   :  { %v3089_v25 = vmul.f32 0.03125, %v3085_v24 }
0x1d2f   :  { %v3091_v27 = vsub.f32 %v3080_v22, %v3089_v25 }
0x1d30   :  { %v3088_v32 = vpop.xlane.xlu0 %3087 }
0x1d31   :  { %v3090_v26 = vmul.f32 0.03125, %v3088_v32  ;;  %v3093_v33 = vmul.f32 %v3091_v27, %v3091_v27 }
0x1d33   :  { %v3092_v9 = vsub.f32 %v3081_v47, %v3090_v26  ;;  %v3095_v1 = vsel %vm82_vm0, %v3093_v33, 0.0 }
0x1d34   :  { %3096 = vadd.xlane.f32.xlu0 %v3095_v1 }
0x1d35   :  { %v3094_v59 = vmul.f32 %v3092_v9, %v3092_v9 }
0x1d37   :  { %v3098_v62 = vsel %vm82_vm0, %v3094_v59, 0.0 }
0x1d38   :  { %3099 = vadd.xlane.f32.xlu1 %v3098_v62 }
0x1dc1   :  { %v3097_v34 = vpop.xlane.xlu0 %3096 }
0x1dc2   :  { %v3101_v4 = vmul.f32 0.03125, %v3097_v34 }
0x1dc4   :  { %v3103_v46 = vadd.f32 1e-05, %v3101_v4 }
0x1dc5   :  { %v3100_v35 = vpop.xlane.xlu1 %3099 }
0x1dc6   :  { %4235 = vrsqrt.f32 %v3103_v46  ;;  %v3102_v37 = vmul.f32 0.03125, %v3100_v35 }
0x1dc8   :  { %v3104_v39 = vadd.f32 1e-05, %v3102_v37 }
0x1dca   :  { %4237 = vrsqrt.f32 %v3104_v39 }
0x1dd0   :  { %v4236_v43 = vpop.eup %4235 }
0x1dd1   :  { %v3107_v51 = vmul.f32 %v4236_v43, %v3091_v27 }
0x1dd3   :  { %v3113_v50 = vmul.f32 %v3112_v42, %v3107_v51 }
0x1dd4   :  { %v4238_v52 = vpop.eup %4237 }
0x1dd5   :  { %v3108_v55 = vmul.f32 %v4238_v52, %v3092_v9  ;;  %v3119_v56 = vadd.f32 %v3118_v45, %v3113_v50 }
0x1dd7   :  { %v3114_v57 = vmul.f32 %v3112_v42, %v3108_v55  ;;  %v3283_v61 = vsel %vm82_vm0, %v3119_v56, 0.0 }
0x1dd8   :  { %3286 = vst [vmem:[%s4902_s9] sm:$0xff] %v3283_v61 }
0x1dd9   :  { %v3120_v28 = vadd.f32 %v3118_v45, %v3114_v57 }
0x1ddb   :  { %v4019_v41 = vpack.c.bf16 %v3120_v28, %v3119_v56  ;;  %v3284_v31 = vsel %vm82_vm0, %v3120_v28, 0.0 }
0x1ddc   :  { %3287 = vst [vmem:[%s4902_s9 + $0x8] sm:$0xff] %v3284_v31 }
0x1ddd   :  { %4020 = vmatpush3.bf16.msra.mxu1 %v4019_v41 }
0x1dde   :  { %4021 = vmatprep.subr.bf16.mxu1 %v4266_v5 }
0x1de0   :  { %3829 = vmatmul.mubr.msk.f32.vlgmr.msra.gmra.mrb[22].mxu1 %vm303_vm9, %v3399_v6 }
0x1de1   :  { %4023 = vmatpush3.bf16.msra.mxu1 %v4022_v16  ;;  %3839 = vmatprep.mubr.msk.f32.mxu1 %vm4267_vm10, %v4268_v7 }
0x1de2   :  { %4024 = vmatprep.subr.bf16.mxu1 %v4266_v5 }
0x1de5   :  { %4026 = vmatpush3.bf16.msra.mxu1 %v4025_v15 }
0x1eb3   :  { %v3202_v44 = vpop.f32.mrb[22].mxu1 }
0x1eb4   :  { %v3830_v10 = vpop.f32.mrb[23].mxu1  ;;  %3840 = vmatmul.mubr.msk.f32.vlgmr.msra.gmra.mrb[24].mxu1 %vm82_vm0, %v3202_v44 }
0x1f87   :  { %v3279_v11 = vpop.f32.mrb[24].mxu1 }
0x1f88   :  { %v3285_v58 = vsel %vm303_vm9, %v3279_v11, 0.0  ;;  %v3841_v12 = vpop.f32.mrb[25].mxu1 }
0x1f89   :  { %3288 = vst [vmem:[%s4902_s9 + $0x10] sm:$0xff] %v3285_v58 }

</bundles_post_ra>
